<compile_context>
chip_gen: v5e
topology: v5e:2x2
jax: 0.10.0
libtpu: 0.0.40
codegen_flags: <defaults>
</compile_context>

<pallas_src>
import functools

import jax
import jax.numpy as jnp
from jax.experimental import pallas as pl
from jax.experimental.pallas import tpu as pltpu


def _take_prev_lane(v):
    # out[..., m] = v[..., m-1]; position m=0 gets 0 (row-boundary mask applied by caller)
    zero = jnp.zeros_like(v[:, :, :1])
    return jnp.concatenate([zero, v[:, :, :-1]], axis=2)


def _take_next_lane(v):
    # out[..., m] = v[..., m+1]; last position gets 0 (row-boundary mask applied by caller)
    zero = jnp.zeros_like(v[:, :, :1])
    return jnp.concatenate([v[:, :, 1:], zero], axis=2)


def conv_stats_kernel(x_ref, w_ref, out_ref, *, H, W):
    """3x3 'same' conv (no bias) for a tile of images + per-image channel moments.

    x_ref:   (B, Cin, (H+2)*W) f32   vertically zero-padded, row-major flattened spatial
    w_ref:   (Cout, KPAD)      bf16  row order (dy*3+dx)*Cin + c, zero-padded to KPAD
    out_ref: (1, B, 2*Cout)    f32   [ sum_{hw} conv | sum_{hw} conv^2 ] per image/channel
    """
    B, Cin, _ = x_ref.shape
    Cout, KPAD = w_ref.shape
    HW = H * W

    # Column-within-row position of every flattened spatial lane -> masks for the
    # horizontal taps (a lane shift must not leak values across image-row edges).
    col = jax.lax.broadcasted_iota(jnp.int32, (1, 1, HW), 2) % W
    not_first_col = col != 0
    not_last_col = col != (W - 1)

    # In-kernel im2col: nine shifted lane-dense views of the padded image.
    slabs = []
    for dy in range(3):                                   # static unroll over kernel rows
        center = x_ref[:, :, dy * W : dy * W + HW]        # x_pad[c, h+dy, w+1]  (dx=1)
        left = jnp.where(not_first_col, _take_prev_lane(center), 0.0)   # dx=0
        right = jnp.where(not_last_col, _take_next_lane(center), 0.0)   # dx=2
        slabs += [left, center, right]                    # dx order 0, 1, 2
    if KPAD > 9 * Cin:
        slabs.append(jnp.zeros((B, KPAD - 9 * Cin, HW), jnp.float32))
    # Single dense cast of the whole im2col buffer (no per-tap bf16 casts).
    patches = jnp.concatenate(slabs, axis=1).astype(jnp.bfloat16)        # (B, KPAD, HW)

    # One batched MXU contraction: conv[b, co, m] = sum_k w[co, k] * patches[b, k, m]
    w_b = jnp.broadcast_to(w_ref[...], (B, Cout, KPAD))
    conv = jnp.einsum("bok,bkm->bom", w_b, patches,
                      preferred_element_type=jnp.float32)                # (B, Cout, HW) f32

    # Only the per-image first/second moments leave the kernel (lane reductions).
    s = jnp.sum(conv, axis=2)                                            # (B, Cout)
    q = jnp.sum(conv * conv, axis=2)                                     # (B, Cout)
    out_ref[...] = jnp.concatenate([s, q], axis=1)[None]                 # (1, B, 2*Cout)


def darts_forward(x_nchw, params, num_layers=0, b_tile=None):
    # TODO(synk): cells undefined in the provided source; only num_layers=0 supported.
    assert num_layers == 0, "NormalCell/ReductionCell not defined in provided source"
    N, Cin, H, W = x_nchw.shape
    assert Cin == 3

    conv_w = params["conv_w"]                                  # torch layout (Cout, Cin, 3, 3)
    Cout = conv_w.shape[0]
    KPAD = 32                                                  # 27 taps padded to 32

    # Batch tile: amortize per-step overhead; keep >= 2 grid steps for v7x megacore.
    if b_tile is None:
        b_tile = max(1, min(32, N // 2)) if N >= 2 else 1
    n_blocks = pl.cdiv(N, b_tile)
    n_pad = n_blocks * b_tile

    # Plain-JAX prep: f32, vertical zero-pad (Conv2d padding=1), spatial -> lanes.
    xf = x_nchw.astype(jnp.float32)
    xpadv = jnp.pad(xf, ((0, n_pad - N), (0, 0), (1, 1), (0, 0)))        # (n_pad, Cin, H+2, W)
    xflat = xpadv.reshape(n_pad, Cin, (H + 2) * W)

    # Conv weight -> single resident 2D (Cout, KPAD) bf16 tile, rows (dy*3+dx)*Cin + c.
    w2 = jnp.transpose(conv_w, (0, 2, 3, 1)).reshape(Cout, 9 * Cin).astype(jnp.float32)
    w2 = jnp.pad(w2, ((0, 0), (0, KPAD - 9 * Cin))).astype(jnp.bfloat16)

    stats = pl.pallas_call(
        functools.partial(conv_stats_kernel, H=H, W=W),
        grid=(n_blocks,),
        in_specs=[
            pl.BlockSpec((b_tile, Cin, (H + 2) * W), lambda i: (i, 0, 0)),
            pl.BlockSpec((Cout, KPAD), lambda i: (0, 0)),      # invariant resident weight
        ],
        out_specs=pl.BlockSpec((1, b_tile, 2 * Cout), lambda i: (i, 0, 0)),
        out_shape=jax.ShapeDtypeStruct((n_blocks, b_tile, 2 * Cout), jnp.float32),
        compiler_params=pltpu.CompilerParams(
            dimension_semantics=("parallel",),
            vmem_limit_bytes=32 * 1024 * 1024,
        ),
    )(xflat, w2)

    stats = stats.reshape(n_pad, 2 * Cout)[:N]
    sums, sumsq = stats[:, :Cout], stats[:, Cout:]

    # Fused BN (train-mode batch stats, biased var) + GAP + Linear on tiny (N, Cout)
    # arrays: cheaper as one XLA fusion than another Mosaic launch.
    count = float(N * H * W)
    mu = jnp.sum(sums, axis=0) / count                          # (Cout,)
    var = jnp.sum(sumsq, axis=0) / count - mu * mu              # single-pass variance
    scale = params["bn_gamma"].astype(jnp.float32) * jax.lax.rsqrt(var + 1e-5)
    gap = (sums / float(H * W) - mu) * scale + params["bn_beta"].astype(jnp.float32)
    return gap @ params["cls_w"].T.astype(jnp.float32) + params["cls_b"].astype(jnp.float32)


def darts_reference(x_nchw, params):
    """Pure-JAX reference of the same forward (for sanity check)."""
    conv = jax.lax.conv_general_dilated(
        x_nchw.astype(jnp.float32), params["conv_w"].astype(jnp.float32),
        window_strides=(1, 1), padding="SAME",
        dimension_numbers=("NCHW", "OIHW", "NCHW"))
    mu = jnp.mean(conv, axis=(0, 2, 3), keepdims=True)
    var = jnp.mean(jnp.square(conv - mu), axis=(0, 2, 3), keepdims=True)
    y = (conv - mu) * jax.lax.rsqrt(var + 1e-5)
    y = y * params["bn_gamma"][None, :, None, None] + params["bn_beta"][None, :, None, None]
    gap = jnp.mean(y, axis=(2, 3))                               # (N, Cout)
    return gap @ params["cls_w"].T + params["cls_b"][None, :]


if __name__ == "__main__":
    # Small shapes consistent with the module: Darts(C=4, num_classes=10, num_layers=0)
    C, num_classes = 4, 10
    N, H, W = 8, 16, 16                                          # grid = 2 steps with b_tile=4
    C_curr = 3 * C                                               # extractor output channels

    key = jax.random.PRNGKey(0)
    kx, kw, kg, kb, kcw, kcb = jax.random.split(key, 6)

    x = jax.random.normal(kx, (N, 3, H, W), dtype=jnp.float32)
    params = {
        "conv_w": 0.1 * jax.random.normal(kw, (C_curr, 3, 3, 3), dtype=jnp.float32),
        "bn_gamma": 1.0 + 0.1 * jax.random.normal(kg, (C_curr,), dtype=jnp.float32),
        "bn_beta": 0.1 * jax.random.normal(kb, (C_curr,), dtype=jnp.float32),
        "cls_w": 0.1 * jax.random.normal(kcw, (num_classes, C_curr), dtype=jnp.float32),
        "cls_b": 0.1 * jax.random.normal(kcb, (num_classes,), dtype=jnp.float32),
    }

    out = jax.block_until_ready(darts_forward(x, params, num_layers=0))
    ref = jax.block_until_ready(darts_reference(x, params))

    assert out.shape == (N, num_classes)
    # bf16 MXU taps/weights vs f32 reference -> slightly loosened tolerance.
    assert jnp.allclose(out, ref, atol=1e-2, rtol=1e-2), (out, ref)

    print("KERNEL_OK")
</pallas_src>

<mosaic_0001>
module attributes {stable_mosaic.version = 11 : i64} {
  func.func @conv_stats_kernel(%arg0: i32, %arg1: memref<4x3x288xf32, #tpu.memory_space<vmem>>, %arg2: memref<12x32xbf16, #tpu.memory_space<vmem>>, %arg3: memref<1x4x24xf32, #tpu.memory_space<vmem>>) attributes {dimension_semantics = [#tpu.dimension_semantics<parallel>], iteration_bounds = array<i64: 2>, scalar_prefetch = 0 : i64, scratch_operands = 0 : i64, tpu.core_type = #tpu.core_type<tc>, window_params = [{transform_indices = @transform_0, window_bounds = array<i64: 4, 3, 288>}, {pipeline_mode = #tpu.pipeline_mode<synchronous>, transform_indices = @transform_1, window_bounds = array<i64: 12, 32>}, {transform_indices = @transform_2, window_bounds = array<i64: 1, 4, 24>}]} {
    %0 = tpu.iota {dimensions = array<i32: 2>} : vector<1x1x256xi32>
    %c16_i32 = arith.constant 16 : i32
    %c0_i32 = arith.constant 0 : i32
    %1 = arith.cmpi eq, %c16_i32, %c0_i32 : i32
    %c1_i32 = arith.constant 1 : i32
    %2 = arith.select %1, %c1_i32, %c16_i32 : i32
    %3 = vector.broadcast %2 : i32 to vector<1x1x256xi32>
    %4 = arith.remsi %0, %3 : vector<1x1x256xi32>
    %c0_i32_0 = arith.constant 0 : i32
    %5 = vector.broadcast %c0_i32_0 : i32 to vector<1x1x256xi32>
    %6 = arith.cmpi ne, %4, %5 : vector<1x1x256xi32>
    %c0_i32_1 = arith.constant 0 : i32
    %7 = vector.broadcast %c0_i32_1 : i32 to vector<1x1x256xi32>
    %8 = arith.cmpi slt, %4, %7 : vector<1x1x256xi32>
    %c0_i32_2 = arith.constant 0 : i32
    %9 = arith.cmpi slt, %2, %c0_i32_2 : i32
    %10 = vector.broadcast %9 : i1 to vector<1x1x256xi1>
    %11 = vector.broadcast %10 : vector<1x1x256xi1> to vector<1x1x256xi1>
    %12 = arith.xori %8, %11 : vector<1x1x256xi1>
    %13 = arith.andi %12, %6 : vector<1x1x256xi1>
    %14 = vector.broadcast %2 : i32 to vector<1x1x256xi32>
    %15 = arith.addi %4, %14 : vector<1x1x256xi32>
    %16 = arith.select %13, %15, %4 : vector<1x1x256xi1>, vector<1x1x256xi32>
    %c0_i32_3 = arith.constant 0 : i32
    %17 = vector.broadcast %c0_i32_3 : i32 to vector<1x1x256xi32>
    %18 = arith.cmpi ne, %16, %17 : vector<1x1x256xi32>
    %c15_i32 = arith.constant 15 : i32
    %19 = vector.broadcast %c15_i32 : i32 to vector<1x1x256xi32>
    %20 = arith.cmpi ne, %16, %19 : vector<1x1x256xi32>
    %c0 = arith.constant 0 : index
    %c0_4 = arith.constant 0 : index
    %c0_5 = arith.constant 0 : index
    %21 = vector.load %arg1[%c0, %c0_4, %c0_5] : memref<4x3x288xf32, #tpu.memory_space<vmem>>, vector<4x3x256xf32>
    %cst = arith.constant 0.000000e+00 : f32
    %22 = vector.broadcast %cst : f32 to vector<4x3x1xf32>
    %23 = vector.extract_strided_slice %21 {offsets = [0, 0, 0], sizes = [4, 3, 255], strides = [1, 1, 1]} : vector<4x3x256xf32> to vector<4x3x255xf32>
    %24 = tpu.concatenate %22, %23 in 2 : vector<4x3x1xf32>, vector<4x3x255xf32> -> vector<4x3x256xf32>
    %cst_6 = arith.constant 0.000000e+00 : f32
    %25 = vector.shape_cast %18 : vector<1x1x256xi1> to vector<1x1x256xi1>
    %26 = vector.broadcast %25 : vector<1x1x256xi1> to vector<4x3x256xi1>
    %27 = vector.broadcast %cst_6 : f32 to vector<4x3x256xf32>
    %28 = arith.select %26, %24, %27 : vector<4x3x256xi1>, vector<4x3x256xf32>
    %cst_7 = arith.constant 0.000000e+00 : f32
    %29 = vector.broadcast %cst_7 : f32 to vector<4x3x1xf32>
    %30 = vector.extract_strided_slice %21 {offsets = [0, 0, 1], sizes = [4, 3, 255], strides = [1, 1, 1]} : vector<4x3x256xf32> to vector<4x3x255xf32>
    %31 = tpu.concatenate %30, %29 in 2 : vector<4x3x255xf32>, vector<4x3x1xf32> -> vector<4x3x256xf32>
    %cst_8 = arith.constant 0.000000e+00 : f32
    %32 = vector.shape_cast %20 : vector<1x1x256xi1> to vector<1x1x256xi1>
    %33 = vector.broadcast %32 : vector<1x1x256xi1> to vector<4x3x256xi1>
    %34 = vector.broadcast %cst_8 : f32 to vector<4x3x256xf32>
    %35 = arith.select %33, %31, %34 : vector<4x3x256xi1>, vector<4x3x256xf32>
    %c0_9 = arith.constant 0 : index
    %c0_10 = arith.constant 0 : index
    %c16 = arith.constant 16 : index
    %36 = vector.load %arg1[%c0_9, %c0_10, %c16] : memref<4x3x288xf32, #tpu.memory_space<vmem>>, vector<4x3x256xf32>
    %cst_11 = arith.constant 0.000000e+00 : f32
    %37 = vector.broadcast %cst_11 : f32 to vector<4x3x1xf32>
    %38 = vector.extract_strided_slice %36 {offsets = [0, 0, 0], sizes = [4, 3, 255], strides = [1, 1, 1]} : vector<4x3x256xf32> to vector<4x3x255xf32>
    %39 = tpu.concatenate %37, %38 in 2 : vector<4x3x1xf32>, vector<4x3x255xf32> -> vector<4x3x256xf32>
    %cst_12 = arith.constant 0.000000e+00 : f32
    %40 = vector.shape_cast %18 : vector<1x1x256xi1> to vector<1x1x256xi1>
    %41 = vector.broadcast %40 : vector<1x1x256xi1> to vector<4x3x256xi1>
    %42 = vector.broadcast %cst_12 : f32 to vector<4x3x256xf32>
    %43 = arith.select %41, %39, %42 : vector<4x3x256xi1>, vector<4x3x256xf32>
    %cst_13 = arith.constant 0.000000e+00 : f32
    %44 = vector.broadcast %cst_13 : f32 to vector<4x3x1xf32>
    %45 = vector.extract_strided_slice %36 {offsets = [0, 0, 1], sizes = [4, 3, 255], strides = [1, 1, 1]} : vector<4x3x256xf32> to vector<4x3x255xf32>
    %46 = tpu.concatenate %45, %44 in 2 : vector<4x3x255xf32>, vector<4x3x1xf32> -> vector<4x3x256xf32>
    %cst_14 = arith.constant 0.000000e+00 : f32
    %47 = vector.shape_cast %20 : vector<1x1x256xi1> to vector<1x1x256xi1>
    %48 = vector.broadcast %47 : vector<1x1x256xi1> to vector<4x3x256xi1>
    %49 = vector.broadcast %cst_14 : f32 to vector<4x3x256xf32>
    %50 = arith.select %48, %46, %49 : vector<4x3x256xi1>, vector<4x3x256xf32>
    %c0_15 = arith.constant 0 : index
    %c0_16 = arith.constant 0 : index
    %c32 = arith.constant 32 : index
    %51 = vector.load %arg1[%c0_15, %c0_16, %c32] : memref<4x3x288xf32, #tpu.memory_space<vmem>>, vector<4x3x256xf32>
    %cst_17 = arith.constant 0.000000e+00 : f32
    %52 = vector.broadcast %cst_17 : f32 to vector<4x3x1xf32>
    %53 = vector.extract_strided_slice %51 {offsets = [0, 0, 0], sizes = [4, 3, 255], strides = [1, 1, 1]} : vector<4x3x256xf32> to vector<4x3x255xf32>
    %54 = tpu.concatenate %52, %53 in 2 : vector<4x3x1xf32>, vector<4x3x255xf32> -> vector<4x3x256xf32>
    %cst_18 = arith.constant 0.000000e+00 : f32
    %55 = vector.shape_cast %18 : vector<1x1x256xi1> to vector<1x1x256xi1>
    %56 = vector.broadcast %55 : vector<1x1x256xi1> to vector<4x3x256xi1>
    %57 = vector.broadcast %cst_18 : f32 to vector<4x3x256xf32>
    %58 = arith.select %56, %54, %57 : vector<4x3x256xi1>, vector<4x3x256xf32>
    %cst_19 = arith.constant 0.000000e+00 : f32
    %59 = vector.broadcast %cst_19 : f32 to vector<4x3x1xf32>
    %60 = vector.extract_strided_slice %51 {offsets = [0, 0, 1], sizes = [4, 3, 255], strides = [1, 1, 1]} : vector<4x3x256xf32> to vector<4x3x255xf32>
    %61 = tpu.concatenate %60, %59 in 2 : vector<4x3x255xf32>, vector<4x3x1xf32> -> vector<4x3x256xf32>
    %cst_20 = arith.constant 0.000000e+00 : f32
    %62 = vector.shape_cast %20 : vector<1x1x256xi1> to vector<1x1x256xi1>
    %63 = vector.broadcast %62 : vector<1x1x256xi1> to vector<4x3x256xi1>
    %64 = vector.broadcast %cst_20 : f32 to vector<4x3x256xf32>
    %65 = arith.select %63, %61, %64 : vector<4x3x256xi1>, vector<4x3x256xf32>
    %cst_21 = arith.constant 0.000000e+00 : f32
    %66 = vector.broadcast %cst_21 : f32 to vector<4x5x256xf32>
    %67 = tpu.concatenate %28, %21, %35, %43, %36, %50, %58, %51, %65, %66 in 1 : vector<4x3x256xf32>, vector<4x3x256xf32>, vector<4x3x256xf32>, vector<4x3x256xf32>, vector<4x3x256xf32>, vector<4x3x256xf32>, vector<4x3x256xf32>, vector<4x3x256xf32>, vector<4x3x256xf32>, vector<4x5x256xf32> -> vector<4x32x256xf32>
    %68 = arith.truncf %67 : vector<4x32x256xf32> to vector<4x32x256xbf16>
    %c0_22 = arith.constant 0 : index
    %c0_23 = arith.constant 0 : index
    %69 = vector.load %arg2[%c0_22, %c0_23] : memref<12x32xbf16, #tpu.memory_space<vmem>>, vector<12x32xbf16>
    %70 = vector.shape_cast %69 : vector<12x32xbf16> to vector<1x12x32xbf16>
    %71 = vector.broadcast %70 : vector<1x12x32xbf16> to vector<4x12x32xbf16>
    "tpu.trace_start"() <{level = 10 : i32, message = "bok,bkm->bom"}> : () -> ()
    %cst_24 = arith.constant dense<0.000000e+00> : vector<4x12x256xf32>
    %72 = tpu.matmul %71, %68, %cst_24 {dimension_numbers = #tpu.dot_dimension_numbers<[2], [1], [1], [2], [0, 0, 0, 1, 1, 2], [0], [0]>} : vector<4x12x32xbf16>, vector<4x32x256xbf16>, vector<4x12x256xf32> -> vector<4x12x256xf32>
    "tpu.trace_stop"() : () -> ()
    %cst_25 = arith.constant dense<0.000000e+00> : vector<4x12xf32>
    %73 = vector.multi_reduction <add>, %72, %cst_25 [2] : vector<4x12x256xf32> to vector<4x12xf32>
    %74 = arith.mulf %72, %72 : vector<4x12x256xf32>
    %cst_26 = arith.constant dense<0.000000e+00> : vector<4x12xf32>
    %75 = vector.multi_reduction <add>, %74, %cst_26 [2] : vector<4x12x256xf32> to vector<4x12xf32>
    %76 = tpu.concatenate %73, %75 in 1 : vector<4x12xf32>, vector<4x12xf32> -> vector<4x24xf32>
    %77 = vector.shape_cast %76 : vector<4x24xf32> to vector<1x4x24xf32>
    %c0_27 = arith.constant 0 : index
    %c0_28 = arith.constant 0 : index
    %c0_29 = arith.constant 0 : index
    %78 = vector.load %arg3[%c0_27, %c0_28, %c0_29] : memref<1x4x24xf32, #tpu.memory_space<vmem>>, vector<1x4x24xf32>
    tpu.vector_store %arg3[%c0_27, %c0_28, %c0_29], %77 {strides = array<i32>} : memref<1x4x24xf32, #tpu.memory_space<vmem>>, vector<1x4x24xf32>,
    return
  }
  func.func @transform_0(%arg0: i32) -> (i32, i32, i32) {
    %c0_i32 = arith.constant 0 : i32
    %c0_i32_0 = arith.constant 0 : i32
    %c0_i32_1 = arith.constant 0 : i32
    return %arg0, %c0_i32, %c0_i32_0 : i32, i32, i32
  }
  func.func @transform_1(%arg0: i32) -> (i32, i32) {
    %c0_i32 = arith.constant 0 : i32
    %c0_i32_0 = arith.constant 0 : i32
    %c0_i32_1 = arith.constant 0 : i32
    return %c0_i32, %c0_i32_0 : i32, i32
  }
  func.func @transform_2(%arg0: i32) -> (i32, i32, i32) {
    %c0_i32 = arith.constant 0 : i32
    %c0_i32_0 = arith.constant 0 : i32
    %c0_i32_1 = arith.constant 0 : i32
    return %arg0, %c0_i32, %c0_i32_0 : i32, i32, i32
  }
}

</mosaic_0001>

<bundles_post_ra>
// kernel: tpu_custom_call.1
= control target key start
LH: loop header
LB: loop body
LE: loop exit
PB: predicated region body
PF: predicated region fallthrough
CT: control target
= control target key end

     0   :  { %7 = vsyncpa [#allocation3], 0  ;;  %s2679_s0 = inlined_call_operand.vmem [shape: f32[8,3,288], index: 0, kind: input, shape index: {}]   ;;  %s2680_s1 = inlined_call_operand.vmem [shape: bf16[12,32], index: 1, kind: input, shape index: {}]   ;;  %s2681_s2 = inlined_call_operand.hbm [shape: f32[2,4,24], index: 2, kind: output, shape index: {}]  }
   0x1   :  { %9 = vsyncpa [#allocation3 + $0x1], 0  ;;  %s1795_s9 = smov 0   ;;  %s1797_s10 = smov 0  }
   0x2   :  { %s1799_s11 = smov 0   ;;  %s1801_s12 = smov 0  }
   0x3 LB: > { %s1415_s13 = sadd.s32 4294967295, %s1770_s12   ;;  %s1416_s14 = sadd.s32 4294967294, %s1770_s12   ;;  %s1770_s12 = sphi %s1801_s12, %s2701_s12   ;;  %s1766_s11 = sphi %s1799_s11, %s2700_s11   ;;  %s1762_s10 = sphi %s1797_s10, %s2699_s10   ;;  %s1758_s9 = sphi %s1795_s9, %s2698_s9  }
   0x4   : > { %s1818_s15 = sadd.s32 1, %s1770_s12   ;;  %s69_s16 = sadd.s32 1, %s1766_s11 }
   0x5   : > { %s66_s17 = ssub.s32 %s1770_s12, %s1818_s15  ;;  %p79_p0 = scmp.ne.s32.totalorder %s1766_s11, %s1762_s10 }
   0x6   : > { %p67_p1 = scmp.eq.s32.totalorder %s66_s17, 0  ;;  %p80_p2 = scmp.eq.s32.totalorder %s1415_s13, 1 }
   0x7   : > { %p85_p3 = scmp.ne.s32.totalorder %s1762_s10, %s1758_s9  ;;  %p86_p4 = scmp.eq.s32.totalorder %s1416_s14, 1 }
   0x8   : > { %s1828_s18 = scalar_select %p67_p1, %s1766_s11, %s69_s16  }
   0x9   : > { %p1830_p5 = por %p80_p2, %p79_p0  ;;  %p1834_p6 = por %p86_p4, %p85_p3 }
   0xa   : > { %p1419_p7 = scmp.ge.s32.totalorder %s1770_s12, 1  ;;  %p117_p8 = scmp.lt.s32.totalorder %s1770_s12, 3 }
   0xc   : > { %p118_p9 = pnand %p1419_p7, %p117_p8 }
   0xd   : > { %s1840_s21 = sshll.u32 (!%p118_p9), %s1415_s13, 2  ;;  %s1772_s27 = smov (!%p118_p9), 1  }
   0xe   : > { %121 = sbr.rel (%p118_p9) target bundleno = 571 (0x23b), region = 28  ;;  %p141_p10 = scmp.lt.s32.totalorder (!%p118_p9), %s1840_s21, 7 }
   0xf   : > { %s1773_s28 = smov (!%p118_p9), 127   ;;  %s1774_s29 = smov (!%p118_p9), 113  }
  0x10   : > { %s1775_s30 = smov (!%p118_p9), 111   ;;  %s1776_s3 = smov (!%p118_p9), 97  }
  0x11   : > { %s1777_s4 = smov (!%p118_p9), 95   ;;  %s1778_s5 = smov (!%p118_p9), 112  }
  0x12   : > { %s1779_s6 = smov (!%p118_p9), 96   ;;  %s137_s16 = sand.u32 (!%p118_p9), 1, %s1762_s10  }
  0x13   : > { %s142_s22 = scalar_select %p141_p10, %s1840_s21, 7  ;;  %vm278_vm0 = vcmask 1039360   ;;  %vm218_vm5 = vcmask 7168   ;;  %vm911_vm6 = vcmask 1042432   ;;  %vm370_vm7 = vcmask 924672  }
  0x14   : > { %vm920_vm8 = vcmask 1045504   ;;  %vm929_vm9 = vcmask 1040384   ;;  %vm538_vm10 = vcmask 793600   ;;  %vm446_vm11 = vcmask 908288   ;;  %s2619_s17 = sshll.u32 %s137_s16, 2  ;;  %s1352_s24 = scalar_lea.hbm %s2681_s2, %s1840_s21 }
  0x15   : > { %s1440_s23 = smul.u32 12, %s142_s22  ;;  %vm2682_vm12 = vcmask 1041408   ;;  %vm614_vm13 = vcmask 777216   ;;  %vm770_vm14 = vcmask 916480   ;;  %vm938_vm15 = vcmask 1043456   ;;  %s139_s21 = scalar_lea.vmem [#allocation2], %s2619_s17 }
  0x16   : > { %s2637_s25 = sshll.u32 %s139_s21, 4  ;;  %s1355_s25 = int_to_ptr.vmem [resolvable:$true] %s2637_s25 }
  0x17   : > { %s1847_s26 = scalar_lea.vmem %s2679_s0, %s1440_s23 }
  0x18   : > { %v1850_v0 = vld [vmem:[%s1847_s26] sm:$0x77]  ;;  %v1853_v1 = vld [vmem:[%s1847_s26 + $0x18] sm:$0x77]  ;;  %v1856_v2 = vld [vmem:[%s1847_s26 + $0xc] sm:$0x77] }
  0x19   : > { %187 = vst [vmem:[#allocation1] ss:$2 sm:$0xff] %v1850_v0  ;;  %v1860_v3 = vld [vmem:[%s1847_s26 + $0x24] sm:$0x77]  ;;  %v1876_v21 = vld [vmem:[%s1847_s26 + $0xc] sm:$0x77] }
  0x1a   : > { %195 = vst [vmem:[#allocation1 + $0x20] ss:$2 sm:$0xff] %v1853_v1  ;;  %v1870_v14 = vld [vmem:[%s1847_s26] sm:$0x77]  ;;  %v1873_v20 = vld [vmem:[%s1847_s26 + $0x8] sm:$0x7] }
  0x1b   : > { %191 = vst [vmem:[#allocation1 + $0x10] ss:$2 sm:$0xff] %v1856_v2  ;;  %v1881_v26 = vld [vmem:[%s1847_s26 + $0x14] sm:$0x7]  ;;  %v1885_v29 = vld [vmem:[%s1847_s26 + $0x18] sm:$0x77] }
  0x1c   : > { %199 = vst [vmem:[#allocation1 + $0x30] ss:$2 sm:$0xff] %v1860_v3  ;;  %v1890_v35 = vld [vmem:[%s1847_s26 + $0x20] sm:$0x7]  ;;  %v1893_v36 = vld [vmem:[%s1847_s26 + $0x24] sm:$0x77] }
  0x1d   : > { %v1896_v38 = vld [vmem:[%s1847_s26 + $0x2c] sm:$0x7]  ;;  %v1916_v55 = vld [vmem:[%s1847_s26] sm:$0x77] }
  0x20   : > { %v188_v4 = vld.sshfl [vmem:[#allocation1] sm:$0xff pattern:$0x75316420]  ;;  %v189_v5 = vld.sshfl [vmem:[#allocation1 + $0x8] sm:$0xff pattern:$0x75316420] }
  0x21   : > { %v1488_v6 = vpack.i.bf16 %v189_v5, %v188_v4  ;;  %247 = vst [vmem:[#allocation1] ss:$2 sm:$0xff] %v1850_v0  ;;  %v196_v7 = vld.sshfl [vmem:[#allocation1 + $0x20] sm:$0xff pattern:$0x75316420] }
  0x22   : > { %v197_v8 = vld.sshfl [vmem:[#allocation1 + $0x28] sm:$0xff pattern:$0x75316420]  ;;  %v192_v9 = vld.sshfl [vmem:[#allocation1 + $0x10] sm:$0xff pattern:$0x75316420] }
  0x23   : > { %1489 = vrot.lane.b32.xlu0 %v1488_v6, %s1772_s27  ;;  %v1498_v10 = vpack.i.bf16 %v197_v8, %v196_v7  ;;  %255 = vst [vmem:[#allocation1 + $0x20] ss:$2 sm:$0xff] %v1853_v1  ;;  %v193_v11 = vld.sshfl [vmem:[#allocation1 + $0x18] sm:$0xff pattern:$0x75316420] }
  0x24   : > { %251 = vst [vmem:[#allocation1 + $0x10] ss:$2 sm:$0xff] %v1856_v2  ;;  %v200_v12 = vld.sshfl [vmem:[#allocation1 + $0x30] sm:$0xff pattern:$0x75316420]  ;;  %v1493_v15 = vpack.i.bf16 %v193_v11, %v192_v9 }
  0x25   : > { %1499 = vrot.lane.b32.xlu1 %v1498_v10, %s1772_s27  ;;  %v201_v13 = vld.sshfl [vmem:[#allocation1 + $0x38] sm:$0xff pattern:$0x75316420]  ;;  %v1922_v4 = vld [vmem:[%s1847_s26 + $0x8] sm:$0x7] }
  0x26   : > { %259 = vst [vmem:[#allocation1 + $0x30] ss:$2 sm:$0xff] %v1860_v3  ;;  %v1503_v19 = vpack.i.bf16 %v201_v13, %v200_v12  ;;  %v1927_v5 = vld [vmem:[%s1847_s26 + $0xc] sm:$0x77]  ;;  %v1932_v7 = vld [vmem:[%s1847_s26 + $0x14] sm:$0x7] }
  0x27   : > { %v1935_v8 = vld [vmem:[%s1847_s26 + $0x18] sm:$0x77] }
  0x28   : > { %v248_v16 = vld.sshfl [vmem:[#allocation1] sm:$0xff pattern:$0x75316420]  ;;  %v249_v17 = vld.sshfl [vmem:[#allocation1 + $0x8] sm:$0xff pattern:$0x75316420] }
  0x29   : > { %v1508_v18 = vpack.i.bf16 %v249_v17, %v248_v16  ;;  %323 = vst [vmem:[#allocation1] ss:$2 sm:$0xff] %v1870_v14  ;;  %v1941_v17 = vld [vmem:[%s1847_s26 + $0x20] sm:$0x7] }
  0x2a   : > { %v256_v22 = vld.sshfl [vmem:[#allocation1 + $0x20] sm:$0xff pattern:$0x75316420]  ;;  %v257_v23 = vld.sshfl [vmem:[#allocation1 + $0x28] sm:$0xff pattern:$0x75316420] }
  0x2b   : > { %1494 = vrot.lane.b32.xlu0 %v1493_v15, %s1772_s27  ;;  %1509 = vrot.lane.b32.xlu2 %v1508_v18, %s1773_s28  ;;  %v252_v24 = vld.sshfl [vmem:[#allocation1 + $0x10] sm:$0xff pattern:$0x75316420]  ;;  %v253_v25 = vld.sshfl [vmem:[#allocation1 + $0x18] sm:$0xff pattern:$0x75316420]  ;;  %v1518_v30 = vpack.i.bf16 %v257_v23, %v256_v22 }
  0x2c   : > { %325 = vst [vmem:[#allocation1 + $0x10] ss:$2 sm:$0xff] %v1873_v20  ;;  %v1513_v31 = vpack.i.bf16 %v253_v25, %v252_v24  ;;  %v1950_v23 = vld [vmem:[%s1847_s26 + $0x2c] sm:$0x7] }
  0x2d   : > { %1504 = vrot.lane.b32.xlu1 %v1503_v19, %s1772_s27  ;;  %v260_v27 = vld.sshfl [vmem:[#allocation1 + $0x30] sm:$0xff pattern:$0x75316420]  ;;  %v261_v28 = vld.sshfl [vmem:[#allocation1 + $0x38] sm:$0xff pattern:$0x75316420] }
  0x2e   : > { %330 = vst [vmem:[#allocation1 + $0x20] ss:$2 sm:$0xff] %v1876_v21  ;;  %v1523_v34 = vpack.i.bf16 %v261_v28, %v260_v27  ;;  %v1946_v19 = vld [vmem:[%s1847_s26 + $0x24] sm:$0x77]  ;;  %s2639_s26 = sshll.u32 %s1352_s24, 4  ;;  %s1342_s27 = scalar_lea.sflag [#allocation3], %s137_s16  ;;  %s1357_s26 = int_to_ptr.hbm [resolvable:$true] %s2639_s26 }
  0x2f   : > { %332 = vst [vmem:[#allocation1 + $0x30] ss:$2 sm:$0xff] %v1881_v26 }
  0x30   : > { %v326_v32 = vld.sshfl [vmem:[#allocation1] sm:$0xff pattern:$0x75316420]  ;;  %v327_v33 = vld.sshfl [vmem:[#allocation1 + $0x8] sm:$0xff pattern:$0x75316420] }
  0x31   : > { %336 = vst [vmem:[#allocation1] ss:$2 sm:$0xff] %v1885_v29  ;;  %v1528_v43 = vpack.i.bf16 %v327_v33, %v326_v32 }
  0x33   : > { %1519 = vrot.lane.b32.xlu0 %v1518_v30, %s1773_s28  ;;  %1514 = vrot.lane.b32.xlu2 %v1513_v31, %s1773_s28  ;;  %v328_v37 = vld.sshfl [vmem:[#allocation1 + $0x10] sm:$0xff pattern:$0x75316420] }
  0x34   : > { %337 = vst [vmem:[#allocation1 + $0x10] ss:$2 sm:$0xff] %v1890_v35 }
  0x35   : > { %1524 = vrot.lane.b32.xlu1 %v1523_v34, %s1773_s28  ;;  %v333_v39 = vld.sshfl [vmem:[#allocation1 + $0x20] sm:$0xff pattern:$0x75316420]  ;;  %v334_v40 = vld.sshfl [vmem:[#allocation1 + $0x28] sm:$0xff pattern:$0x75316420] }
  0x36   : > { %341 = vst [vmem:[#allocation1 + $0x20] ss:$2 sm:$0xff] %v1893_v36  ;;  %v335_v41 = vld.sshfl [vmem:[#allocation1 + $0x30] sm:$0xff pattern:$0x75316420]  ;;  %v1533_v42 = vpack.i.bf16 %v333_v39, %v328_v37  ;;  %s1722_s28 = sshra.s32 %s1357_s26, 4  ;;  %s1723_s28 = int_to_ptr.hbm [resolvable:$true] %s1722_s28 }
  0x37   : > { %342 = vst [vmem:[#allocation1 + $0x30] ss:$2 sm:$0xff] %v1896_v38  ;;  %v1538_v51 = vpack.i.bf16 %v335_v41, %v334_v40  ;;  %p1729_p0 = scmp.lt.s32.totalorder %s1723_s28, %s2681_s2 }
  0x38   : > { %v338_v44 = vld.sshfl [vmem:[#allocation1] sm:$0xff pattern:$0x75316420]  ;;  %v1901_v45 = vld.sshfl [vmem:[#allocation1 + $0x8] sm:$0xff pattern:$0x75316420] }
  0x39   : > { %399 = vst [vmem:[#allocation1] ss:$2 sm:$0xff] %v1870_v14 }
  0x3b   : > { %1534 = vrot.lane.b32.xlu0 %v1533_v42, %s1774_s29  ;;  %1529 = vrot.lane.b32.xlu2 %v1528_v43, %s1774_s29  ;;  %v1906_v46 = vld.sshfl [vmem:[#allocation1 + $0x10] sm:$0xff pattern:$0x75316420] }
  0x3c   : > { %401 = vst [vmem:[#allocation1 + $0x10] ss:$2 sm:$0xff] %v1873_v20 }
  0x3d   : > { %v343_v47 = vld.sshfl [vmem:[#allocation1 + $0x20] sm:$0xff pattern:$0x75316420]  ;;  %v344_v48 = vld.sshfl [vmem:[#allocation1 + $0x28] sm:$0xff pattern:$0x75316420] }
  0x3e   : > { %v345_v49 = vld.sshfl [vmem:[#allocation1 + $0x30] sm:$0xff pattern:$0x75316420]  ;;  %406 = vst [vmem:[#allocation1 + $0x20] ss:$2 sm:$0xff] %v1876_v21  ;;  %v1543_v50 = vpack.i.bf16 %v344_v48, %v343_v47 }
  0x3f   : > { %408 = vst [vmem:[#allocation1 + $0x30] ss:$2 sm:$0xff] %v1881_v26  ;;  %v1548_v61 = vpack.i.bf16 %v338_v44, %v345_v49 }
  0x40   : > { %v403_v52 = vld.sshfl [vmem:[#allocation1 + $0x8] sm:$0xff pattern:$0x75316420]  ;;  %v402_v53 = vld.sshfl [vmem:[#allocation1] sm:$0xff pattern:$0x75316420] }
  0x41   : > { %412 = vst [vmem:[#allocation1] ss:$2 sm:$0xff] %v1885_v29 }
  0x43   : > { %1544 = vrot.lane.b32.xlu0 %v1543_v50, %s1774_s29  ;;  %1539 = vrot.lane.b32.xlu2 %v1538_v51, %s1774_s29  ;;  %v404_v54 = vld.sshfl [vmem:[#allocation1 + $0x10] sm:$0xff pattern:$0x75316420] }
  0x44   : > { %413 = vst [vmem:[#allocation1 + $0x10] ss:$2 sm:$0xff] %v1890_v35  ;;  %v1563_v13 = vpack.i.bf16 %v402_v53, %v404_v54 }
  0x45   : > { %v410_v56 = vld.sshfl [vmem:[#allocation1 + $0x28] sm:$0xff pattern:$0x75316420]  ;;  %v409_v57 = vld.sshfl [vmem:[#allocation1 + $0x20] sm:$0xff pattern:$0x75316420] }
  0x46   : > { %v411_v58 = vld.sshfl [vmem:[#allocation1 + $0x30] sm:$0xff pattern:$0x75316420]  ;;  %417 = vst [vmem:[#allocation1 + $0x20] ss:$2 sm:$0xff] %v1893_v36  ;;  %v1558_v60 = vpack.i.bf16 %v403_v52, %v409_v57 }
  0x47   : > { %418 = vst [vmem:[#allocation1 + $0x30] ss:$2 sm:$0xff] %v1896_v38  ;;  %v1553_v59 = vpack.i.bf16 %v411_v58, %v410_v56 }
  0x48   : > { %v415_v62 = vld.sshfl [vmem:[#allocation1 + $0x8] sm:$0xff pattern:$0x75316420]  ;;  %v414_v63 = vld.sshfl [vmem:[#allocation1] sm:$0xff pattern:$0x75316420] }
  0x49   : > { %1554 = vrot.lane.b32.xlu1 %v1553_v59, %s1775_s30  ;;  %491 = vst [vmem:[#allocation1] ss:$2 sm:$0xff] %v1916_v55 }
  0x4b   : > { %1559 = vrot.lane.b32.xlu0 %v1558_v60, %s1775_s30  ;;  %1549 = vrot.lane.b32.xlu2 %v1548_v61, %s1774_s29  ;;  %v416_v6 = vld.sshfl [vmem:[#allocation1 + $0x10] sm:$0xff pattern:$0x75316420] }
  0x4c   : > { %493 = vst [vmem:[#allocation1 + $0x10] ss:$2 sm:$0xff] %v1922_v4  ;;  %v1578_v27 = vpack.i.bf16 %v414_v63, %v416_v6 }
  0x4d   : > { %v419_v9 = vld.sshfl [vmem:[#allocation1 + $0x20] sm:$0xff pattern:$0x75316420]  ;;  %v420_v10 = vld.sshfl [vmem:[#allocation1 + $0x28] sm:$0xff pattern:$0x75316420] }
  0x4e   : > { %498 = vst [vmem:[#allocation1 + $0x20] ss:$2 sm:$0xff] %v1927_v5  ;;  %v1573_v11 = vpack.i.bf16 %v415_v62, %v419_v9  ;;  %v421_v12 = vld.sshfl [vmem:[#allocation1 + $0x30] sm:$0xff pattern:$0x75316420] }
  0x4f   : > { %500 = vst [vmem:[#allocation1 + $0x30] ss:$2 sm:$0xff] %v1932_v7  ;;  %v1568_v30 = vpack.i.bf16 %v421_v12, %v420_v10 }
  0x50   : > { %v495_v15 = vld.sshfl [vmem:[#allocation1 + $0x8] sm:$0xff pattern:$0x75316420]  ;;  %v494_v16 = vld.sshfl [vmem:[#allocation1] sm:$0xff pattern:$0x75316420] }
  0x51   : > { %1574 = vrot.lane.b32.xlu1 %v1573_v11, %s1775_s30  ;;  %504 = vst [vmem:[#allocation1] ss:$2 sm:$0xff] %v1935_v8 }
  0x53   : > { %v496_v18 = vld.sshfl [vmem:[#allocation1 + $0x10] sm:$0xff pattern:$0x75316420]  ;;  %1564 = vrot.lane.b32.xlu2 %v1563_v13, %s1775_s30 }
  0x54   : > { %505 = vst [vmem:[#allocation1 + $0x10] ss:$2 sm:$0xff] %v1941_v17  ;;  %v1593_v22 = vpack.i.bf16 %v496_v18, %v495_v15 }
  0x55   : > { %v501_v24 = vld.sshfl [vmem:[#allocation1 + $0x20] sm:$0xff pattern:$0x75316420]  ;;  %v502_v25 = vld.sshfl [vmem:[#allocation1 + $0x28] sm:$0xff pattern:$0x75316420] }
  0x56   : > { %1594 = vrot.lane.b32.xlu0 %v1593_v22, %s1776_s3  ;;  %509 = vst [vmem:[#allocation1 + $0x20] ss:$2 sm:$0xff] %v1946_v19  ;;  %v503_v28 = vld.sshfl [vmem:[#allocation1 + $0x30] sm:$0xff pattern:$0x75316420]  ;;  %v1583_v42 = vpack.i.bf16 %v502_v25, %v501_v24 }
  0x57   : > { %510 = vst [vmem:[#allocation1 + $0x30] ss:$2 sm:$0xff] %v1950_v23  ;;  %v1588_v39 = vpack.i.bf16 %v494_v16, %v503_v28 }
  0x58   : > { %v506_v31 = vld.sshfl [vmem:[#allocation1] sm:$0xff pattern:$0x75316420]  ;;  %v1955_v32 = vld.sshfl [vmem:[#allocation1 + $0x8] sm:$0xff pattern:$0x75316420] }
  0x59   : > { %1579 = vrot.lane.b32.xlu1 %v1578_v27, %s1775_s30  ;;  %567 = vst [vmem:[#allocation1] ss:$2 sm:$0xff] %v1916_v55 }
  0x5b   : > { %1569 = vrot.lane.b32.xlu2 %v1568_v30, %s1775_s30  ;;  %v1960_v33 = vld.sshfl [vmem:[#allocation1 + $0x10] sm:$0xff pattern:$0x75316420] }
  0x5c   : > { %569 = vst [vmem:[#allocation1 + $0x10] ss:$2 sm:$0xff] %v1922_v4 }
  0x5d   : > { %v511_v34 = vld.sshfl [vmem:[#allocation1 + $0x20] sm:$0xff pattern:$0x75316420]  ;;  %v512_v37 = vld.sshfl [vmem:[#allocation1 + $0x28] sm:$0xff pattern:$0x75316420] }
  0x5e   : > { %v1598_v40 = vpack.i.bf16 %v512_v37, %v511_v34  ;;  %574 = vst [vmem:[#allocation1 + $0x20] ss:$2 sm:$0xff] %v1927_v5  ;;  %v513_v41 = vld.sshfl [vmem:[#allocation1 + $0x30] sm:$0xff pattern:$0x75316420] }
  0x5f   : > { %576 = vst [vmem:[#allocation1 + $0x30] ss:$2 sm:$0xff] %v1932_v7  ;;  %v1603_v53 = vpack.i.bf16 %v506_v31, %v513_v41 }
  0x60   : > { %1599 = vrot.lane.b32.xlu0 %v1598_v40, %s1776_s3  ;;  %v571_v43 = vld.sshfl [vmem:[#allocation1 + $0x8] sm:$0xff pattern:$0x75316420]  ;;  %v570_v44 = vld.sshfl [vmem:[#allocation1] sm:$0xff pattern:$0x75316420] }
  0x61   : > { %1589 = vrot.lane.b32.xlu1 %v1588_v39, %s1776_s3  ;;  %580 = vst [vmem:[#allocation1] ss:$2 sm:$0xff] %v1935_v8 }
  0x63   : > { %1584 = vrot.lane.b32.xlu2 %v1583_v42, %s1776_s3  ;;  %v572_v47 = vld.sshfl [vmem:[#allocation1 + $0x10] sm:$0xff pattern:$0x75316420] }
  0x64   : > { %581 = vst [vmem:[#allocation1 + $0x10] ss:$2 sm:$0xff] %v1941_v17  ;;  %v1618_v58 = vpack.i.bf16 %v570_v44, %v572_v47 }
  0x65   : > { %v578_v48 = vld.sshfl [vmem:[#allocation1 + $0x28] sm:$0xff pattern:$0x75316420]  ;;  %v577_v49 = vld.sshfl [vmem:[#allocation1 + $0x20] sm:$0xff pattern:$0x75316420] }
  0x66   : > { %v579_v50 = vld.sshfl [vmem:[#allocation1 + $0x30] sm:$0xff pattern:$0x75316420]  ;;  %v1613_v51 = vpack.i.bf16 %v571_v43, %v577_v49  ;;  %585 = vst [vmem:[#allocation1 + $0x20] ss:$2 sm:$0xff] %v1946_v19 }
  0x67   : > { %v1608_v52 = vpack.i.bf16 %v579_v50, %v578_v48  ;;  %586 = vst [vmem:[#allocation1 + $0x30] ss:$2 sm:$0xff] %v1950_v23 }
  0x68   : > { %v583_v54 = vld.sshfl [vmem:[#allocation1 + $0x8] sm:$0xff pattern:$0x75316420]  ;;  %v582_v56 = vld.sshfl [vmem:[#allocation1] sm:$0xff pattern:$0x75316420] }
  0x69   : > { %1609 = vrot.lane.b32.xlu0 %v1608_v52, %s1777_s4  ;;  %1614 = vrot.lane.b32.xlu1 %v1613_v51, %s1777_s4  ;;  %643 = vst [vmem:[#allocation1] ss:$2 sm:$0xff] %v1850_v0 }
  0x6b   : > { %1604 = vrot.lane.b32.xlu2 %v1603_v53, %s1776_s3  ;;  %v584_v57 = vld.sshfl [vmem:[#allocation1 + $0x10] sm:$0xff pattern:$0x75316420] }
  0x6c   : > { %647 = vst [vmem:[#allocation1 + $0x10] ss:$2 sm:$0xff] %v1856_v2  ;;  %v1668_v18 = vpack.i.bf16 %v582_v56, %v584_v57 }
  0x6d   : > { %v588_v59 = vld.sshfl [vmem:[#allocation1 + $0x28] sm:$0xff pattern:$0x75316420]  ;;  %v587_v60 = vld.sshfl [vmem:[#allocation1 + $0x20] sm:$0xff pattern:$0x75316420] }
  0x6e   : > { %v589_v61 = vld.sshfl [vmem:[#allocation1 + $0x30] sm:$0xff pattern:$0x75316420]  ;;  %651 = vst [vmem:[#allocation1 + $0x20] ss:$2 sm:$0xff] %v1853_v1  ;;  %v1628_v1 = vpack.i.bf16 %v583_v54, %v587_v60 }
  0x6f   : > { %v1623_v62 = vpack.i.bf16 %v589_v61, %v588_v59  ;;  %655 = vst [vmem:[#allocation1 + $0x30] ss:$2 sm:$0xff] %v1860_v3 }
  0x70   : > { %v1979_v63 = vld.sshfl [vmem:[#allocation1] sm:$0xff pattern:$0x75316420]  ;;  %v1981_v6 = vld.sshfl [vmem:[#allocation1 + $0x8] sm:$0xff pattern:$0x75316420] }
  0x71   : > { %1619 = vrot.lane.b32.xlu0 %v1618_v58, %s1777_s4  ;;  %1624 = vrot.lane.b32.xlu1 %v1623_v62, %s1777_s4  ;;  %723 = vst [vmem:[#allocation1 + $0x1] ss:$2 sm:$0xff] %v1870_v14 }
  0x73   : > { %v1986_v0 = vld.sshfl [vmem:[#allocation1 + $0x10] sm:$0xff pattern:$0x75316420]  ;;  %v1988_v2 = vld.sshfl [vmem:[#allocation1 + $0x18] sm:$0xff pattern:$0x75316420] }
  0x74   : > { %725 = vst [vmem:[#allocation1 + $0x11] ss:$2 sm:$0xff] %v1873_v20  ;;  %v148_v20 = vlaneseq }
  0x75   : > { %v1991_v9 = vld.sshfl [vmem:[#allocation1 + $0x20] sm:$0xff pattern:$0x75316420]  ;;  %v1993_v3 = vld.sshfl [vmem:[#allocation1 + $0x28] sm:$0xff pattern:$0x75316420] }
  0x76   : > { %730 = vst [vmem:[#allocation1 + $0x21] ss:$2 sm:$0xff] %v1876_v21  ;;  %v1996_v10 = vld.sshfl [vmem:[#allocation1 + $0x30] sm:$0xff pattern:$0x75316420]  ;;  %v2005_v22 = vand.u32 127, %v148_v20 }
  0x77   : > { %v1998_v11 = vld.sshfl [vmem:[#allocation1 + $0x38] sm:$0xff pattern:$0x75316420]  ;;  %v660_v20 = vrot.slane %v1986_v0, 5 }
  0x78   : > { %v727_v12 = vld.sshfl [vmem:[#allocation1 + $0x8] sm:$0xff pattern:$0x75316420]  ;;  %v726_v13 = vld.sshfl [vmem:[#allocation1] sm:$0xff pattern:$0x75316420] }
  0x79   : > { %1629 = vrot.lane.b32.xlu0 %v1628_v1, %s1777_s4  ;;  %732 = vst [vmem:[#allocation1 + $0x31] ss:$2 sm:$0xff] %v1881_v26  ;;  %v150_v25 = vadd.s32 128, %v2005_v22 }
  0x7a   : > { %736 = vst [vmem:[#allocation1 + $0x1] ss:$2 sm:$0xff] %v1885_v29 }
  0x7b   : > { %v728_v14 = vld.sshfl [vmem:[#allocation1 + $0x10] sm:$0xff pattern:$0x75316420]  ;;  %v162_v34 = vand.u32 15, %v150_v25 }
  0x7c   : > { %737 = vst [vmem:[#allocation1 + $0x11] ss:$2 sm:$0xff] %v1890_v35  ;;  %v1643_v27 = vpack.i.bf16 %v728_v14, %v727_v12  ;;  %v658_v12 = vrot.slane %v1979_v63, 5  ;;  %v662_v14 = vrot.slane %v1991_v9, 5 }
  0x7d   : > { %v733_v15 = vld.sshfl [vmem:[#allocation1 + $0x20] sm:$0xff pattern:$0x75316420]  ;;  %v734_v16 = vld.sshfl [vmem:[#allocation1 + $0x28] sm:$0xff pattern:$0x75316420] }
  0x7e   : > { %v1633_v21 = vpack.i.bf16 %v734_v16, %v733_v15  ;;  %741 = vst [vmem:[#allocation1 + $0x21] ss:$2 sm:$0xff] %v1893_v36  ;;  %vm2034_vm2 = vcmp.ne.s32.totalorder %v162_v34, 15  ;;  %vm2049_vm4 = vcmp.ne.s32.totalorder %v162_v34, 0 }
  0x80   : > { %1634 = vrot.lane.b32.xlu1 %v1633_v21, %s1778_s5  ;;  %v735_v24 = vld.sshfl [vmem:[#allocation1 + $0x30] sm:$0xff pattern:$0x75316420] }
  0x81   : > { %1669 = vrot.lane.b32.xlu0 %v1668_v18, %s1777_s4  ;;  %v1638_v26 = vpack.i.bf16 %v726_v13, %v735_v24  ;;  %742 = vst [vmem:[#allocation1 + $0x31] ss:$2 sm:$0xff] %v1896_v38  ;;  %v2010_v29 = vld.sshfl [vmem:[#allocation1] sm:$0xff pattern:$0x75316420]  ;;  %v155_v38 = vand.u32 15, %v2005_v22 }
  0x82   : > { %v2012_v35 = vld.sshfl [vmem:[#allocation1 + $0x8] sm:$0xff pattern:$0x75316420]  ;;  %v661_v24 = vrot.slane %v1988_v2, 5  ;;  %s1728_s4 = scalar_lea.hbm %s2681_s2, 8 }
  0x83   : > { %1639 = vrot.lane.b32.xlu2 %v1638_v26, %s1778_s5  ;;  %v2016_v36 = vld.sshfl [vmem:[#allocation1 + $0x10] sm:$0xff pattern:$0x75316420]  ;;  %835 = vst [vmem:[#allocation1] ss:$2 sm:$0xff] %v1916_v55  ;;  %vm2030_vm1 = vcmp.ne.s32.totalorder %v155_v38, 15 }
  0x84   : > { %837 = vst [vmem:[#allocation1 + $0x10] ss:$2 sm:$0xff] %v1922_v4  ;;  %vm2042_vm3 = vcmp.ne.s32.totalorder %v155_v38, 0  ;;  %v1425_v4 = vld [vmem:[%s2680_s1] sm:$0xf] }
  0x85   : > { %v1510_v28 = vpop.permute.xlu2 %1509  ;;  %v2020_v30 = vld.sshfl [vmem:[#allocation1 + $0x20] sm:$0xff pattern:$0x75316420]  ;;  %v2022_v31 = vld.sshfl [vmem:[#allocation1 + $0x28] sm:$0xff pattern:$0x75316420] }
  0x86   : > { %842 = vst [vmem:[#allocation1 + $0x20] ss:$2 sm:$0xff] %v1927_v5  ;;  %v1512_v37 = vunpack.i.h.bf16 %v1510_v28  ;;  %v1511_v55 = vunpack.i.l.bf16 %v1510_v28  ;;  %v1673_v26 = vpack.i.bf16 %v2022_v31, %v2020_v30  ;;  %v1663_v28 = vpack.i.bf16 %v1906_v46, %v1901_v45 }
  0x88   : > { %1644 = vrot.lane.b32.xlu1 %v1643_v27, %s1778_s5  ;;  %v2027_v39 = vld.sshfl [vmem:[#allocation1 + $0x30] sm:$0xff pattern:$0x75316420]  ;;  %v291_v5 = vsel %vm278_vm0, %v1512_v37, 0.0  ;;  %v279_v48 = vsel %vm278_vm0, %v1511_v55, %v1512_v37 }
  0x89   : > { %844 = vst [vmem:[#allocation1 + $0x30] ss:$2 sm:$0xff] %v1932_v7  ;;  %v300_v56 = vsel %vm2034_vm2, %v291_v5, 0.0 }
  0x8a   : > { %v839_v40 = vld.sshfl [vmem:[#allocation1 + $0x8] sm:$0xff pattern:$0x75316420]  ;;  %v838_v47 = vld.sshfl [vmem:[#allocation1] sm:$0xff pattern:$0x75316420] }
  0x8b   : > { %v840_v42 = vld.sshfl [vmem:[#allocation1 + $0x10] sm:$0xff pattern:$0x75316420]  ;;  %v859_v43 = vrot.slane %v839_v40, 3  ;;  %v858_v57 = vrot.slane %v838_v47, 3  ;;  %v2062_v13 = vrot.slane %v300_v56, 2 }
  0x8c   : > { %v860_v44 = vrot.slane %v840_v42, 3  ;;  %849 = vst [vmem:[#allocation1 + $0x10] ss:$2 sm:$0xff] %v1941_v17 }
  0x8d   : > { %v845_v7 = vld.sshfl [vmem:[#allocation1 + $0x20] sm:$0xff pattern:$0x75316420]  ;;  %v846_v49 = vld.sshfl [vmem:[#allocation1 + $0x28] sm:$0xff pattern:$0x75316420]  ;;  %v1515_v50 = vpop.permute.xlu2 %1514 }
  0x8e   : > { %v861_v51 = vrot.slane %v845_v7, 3  ;;  %v862_v52 = vrot.slane %v846_v49, 3  ;;  %853 = vst [vmem:[#allocation1 + $0x20] ss:$2 sm:$0xff] %v1946_v19  ;;  %v1683_v53 = vpack.i.bf16 %v860_v44, %v859_v43  ;;  %v1517_v17 = vunpack.i.h.bf16 %v1515_v50 }
  0x8f   : > { %848 = vst [vmem:[#allocation1] ss:$2 sm:$0xff] %v1935_v8  ;;  %v1516_v58 = vunpack.i.l.bf16 %v1515_v50  ;;  %v299_v19 = vsel %vm2030_vm1, %v279_v48, 0.0 }
  0x90   : > { %v1648_v60 = vpack.i.bf16 %v862_v52, %v861_v51  ;;  %1684 = vrot.lane.b32.xlu0 %v1683_v53, %s1779_s6  ;;  %v847_v61 = vld.sshfl [vmem:[#allocation1 + $0x30] sm:$0xff pattern:$0x75316420]  ;;  %v292_v8 = vsel %vm278_vm0, %v1517_v17, 0.0  ;;  %v2067_v15 = vrot.slane %v299_v19, 2  ;;  %v663_v53 = vrot.slane %v1993_v3, 5 }
  0x91   : > { %v863_v62 = vrot.slane %v847_v61, 3  ;;  %854 = vst [vmem:[#allocation1 + $0x30] ss:$2 sm:$0xff] %v1950_v23  ;;  %v2059_v1 = vsel %vm278_vm0, %v1516_v58, %v1517_v17  ;;  %v659_v23 = vrot.slane %v1981_v6, 5  ;;  %v302_v18 = vsel %vm2034_vm2, %v292_v8, 0.0 }
  0x92   : > { %1649 = vrot.lane.b32.xlu1 %v1648_v60, %s1779_s6  ;;  %v301_v63 = vsel %vm2030_vm1, %v2059_v1, 0.0  ;;  %v1658_v6 = vpack.i.bf16 %v1960_v33, %v1955_v32 }
  0x93   : > { %v1653_v16 = vpack.i.bf16 %v858_v57, %v863_v62  ;;  %v852_v21 = vld.sshfl [vmem:[#allocation1 + $0x10] sm:$0xff pattern:$0x75316420] }
  0x94   : > { %v866_v44 = vrot.slane %v852_v21, 3 }
  0x95   : > { %1654 = vrot.lane.b32.xlu2 %v1653_v16, %s1779_s6  ;;  %v1490_v9 = vpop.permute.xlu0 %1489  ;;  %v855_v25 = vld.sshfl [vmem:[#allocation1 + $0x20] sm:$0xff pattern:$0x75316420]  ;;  %v856_v27 = vld.sshfl [vmem:[#allocation1 + $0x28] sm:$0xff pattern:$0x75316420]  ;;  %v2083_v40 = vpop.permute.xlu2 %1529 }
  0x96   : > { %v1492_v38 = vunpack.i.h.bf16 %v1490_v9  ;;  %v1491_v34 = vunpack.i.l.bf16 %v1490_v9  ;;  %v867_v37 = vrot.slane %v855_v25, 3  ;;  %v868_v55 = vrot.slane %v856_v27, 3  ;;  %v851_v5 = vld.sshfl [vmem:[#allocation1 + $0x8] sm:$0xff pattern:$0x75316420] }
  0x97   : > { %v1532_v42 = vunpack.i.h.bf16 %v2083_v40  ;;  %v1531_v43 = vunpack.i.l.bf16 %v2083_v40  ;;  %v1500_v30 = vpop.permute.xlu1 %1499  ;;  %v865_v31 = vrot.slane %v851_v5, 3  ;;  %v850_v47 = vld.sshfl [vmem:[#allocation1] sm:$0xff pattern:$0x75316420] }
  0x98   : > { %v219_v32 = vsel %vm218_vm5, %v1491_v34, %v1492_v38  ;;  %v231_v33 = vsel %vm218_vm5, 0.0, %v1491_v34  ;;  %v1688_v48 = vpack.i.bf16 %v868_v55, %v867_v37  ;;  %v1502_v7 = vunpack.i.h.bf16 %v1500_v30  ;;  %v857_v49 = vld.sshfl [vmem:[#allocation1 + $0x30] sm:$0xff pattern:$0x75316420] }
  0x99   : > { %v239_v50 = vsel %vm2042_vm3, %v231_v33, 0.0  ;;  %v371_v51 = vsel %vm370_vm7, %v1531_v43, %v1532_v42  ;;  %v1501_v52 = vunpack.i.l.bf16 %v1500_v30  ;;  %v240_v56 = vsel %vm2049_vm4, %v219_v32, 0.0 }
  0x9a   : > { %v912_v57 = vsel %vm911_vm6, %v239_v50, %v658_v12  ;;  %1674 = vrot.lane.b32.xlu1 %v1673_v26, %s1778_s5  ;;  %1689 = vrot.lane.b32.xlu0 %v1688_v48, %s1779_s6  ;;  %v387_v17 = vsel %vm218_vm5, 0.0, %v371_v51  ;;  %v864_v58 = vrot.slane %v850_v47, 3  ;;  %v869_v3 = vrot.slane %v857_v49, 3 }
  0x9b   : > { %v391_v19 = vsel %vm2042_vm3, %v387_v17, 0.0  ;;  %v221_v60 = vsel %vm218_vm5, %v1501_v52, %v1502_v7  ;;  %v233_v61 = vsel %vm218_vm5, 0.0, %v1501_v52  ;;  %v2109_v12 = vrot.slane %v302_v18, 2 }
  0x9c   : > { %v706_v62 = vrot.slane %v391_v19, 7  ;;  %v243_v8 = vsel %vm2042_vm3, %v233_v61, 0.0  ;;  %v244_v1 = vsel %vm2049_vm4, %v221_v60, 0.0  ;;  %v913_v9 = vsel %vm911_vm6, %v240_v56, %v659_v23 }
  0x9d   : > { %1659 = vrot.lane.b32.xlu2 %v1658_v6, %s1776_s3  ;;  %v916_v16 = vsel %vm911_vm6, %v243_v8, %v662_v14  ;;  %v1495_v21 = vpop.permute.xlu0 %1494  ;;  %v921_v26 = vsel %vm920_vm8, %v912_v57, %v2067_v15  ;;  %v1698_v38 = vpack.i.bf16 %v866_v44, %v865_v31  ;;  %v1693_v34 = vpack.i.bf16 %v864_v58, %v869_v3  ;;  %v1540_v46 = vpop.permute.xlu2 %1539 }
  0x9e   : > { %v1497_v25 = vunpack.i.h.bf16 %v1495_v21  ;;  %v1496_v27 = vunpack.i.l.bf16 %v1495_v21  ;;  %v2116_v37 = vrot.slane %v301_v63, 2  ;;  %v2120_v18 = vsel %vm929_vm9, %v2067_v15, %v706_v62 }
  0x9f   : > { %v1505_v55 = vpop.permute.xlu1 %1504  ;;  %v922_v14 = vsel %vm920_vm8, %v913_v9, %v2062_v13  ;;  %v917_v6 = vsel %vm911_vm6, %v244_v1, %v663_v53  ;;  %v664_v43 = vrot.slane %v1996_v10, 5  ;;  %v665_v44 = vrot.slane %v1998_v11, 5 }
  0xa0   : > { %v220_v23 = vsel %vm218_vm5, %v1496_v27, %v1497_v25  ;;  %v232_v5 = vsel %vm218_vm5, 0.0, %v1496_v27  ;;  %v1507_v30 = vunpack.i.h.bf16 %v1505_v55  ;;  %v1506_v15 = vunpack.i.l.bf16 %v1505_v55 }
  0xa1   : > { %v241_v63 = vsel %vm2042_vm3, %v232_v5, 0.0  ;;  %v242_v31 = vsel %vm2049_vm4, %v220_v23, 0.0  ;;  %v2138_v32 = vpack.c.bf16 %v922_v14, %v921_v26  ;;  %v1703_v53 = vpack.i.bf16 %v2016_v36, %v2012_v35 }
  0xa2   : > { %v914_v47 = vsel %vm911_vm6, %v241_v63, %v660_v20  ;;  %1699 = vrot.lane.b32.xlu0 %v1698_v38, %s1779_s6  ;;  %1694 = vrot.lane.b32.xlu1 %v1693_v34, %s1779_s6  ;;  %v915_v10 = vsel %vm911_vm6, %v242_v31, %v661_v24  ;;  %v222_v33 = vsel %vm218_vm5, %v1506_v15, %v1507_v30  ;;  %v234_v48 = vsel %vm218_vm5, 0.0, %v1506_v15 }
  0xa3   : > { %v923_v11 = vsel %vm920_vm8, %v914_v47, %v2116_v37  ;;  %v924_v0 = vsel %vm920_vm8, %v915_v10, %v2109_v12  ;;  %v245_v20 = vsel %vm2042_vm3, %v234_v48, 0.0  ;;  %v246_v7 = vsel %vm2049_vm4, %v222_v33, 0.0 }
  0xa4   : > { %v918_v2 = vsel %vm911_vm6, %v245_v20, %v664_v43  ;;  %v2158_v49 = vpack.c.bf16 %v924_v0, %v923_v11  ;;  %v919_v50 = vsel %vm911_vm6, %v246_v7, %v665_v44  ;;  %v1678_v60 = vpack.i.bf16 %v2010_v29, %v2027_v39 }
  0xa5   : > { %1664 = vrot.lane.b32.xlu2 %v1663_v28, %s1774_s29  ;;  %v1520_v24 = vpop.permute.xlu0 %1519  ;;  %v1541_v62 = vunpack.i.l.bf16 %v1540_v46  ;;  %v2202_v63 = vpop.permute.xlu2 %1549  ;;  %s1724_s29 = scalar_lea.hbm %s1723_s28, 4 }
  0xa6   : > { %v1522_v51 = vunpack.i.h.bf16 %v1520_v24  ;;  %v1521_v52 = vunpack.i.l.bf16 %v1520_v24  ;;  %v1551_v40 = vunpack.i.l.bf16 %v2202_v63  ;;  %p1725_p11 = scmp.ne.s32.totalorder %s1723_s28, %s1724_s29  ;;  %p1730_p1 = scmp.lt.s32.totalorder %s1728_s4, %s1724_s29 }
  0xa7   : > { %v1525_v56 = vpop.permute.xlu1 %1524 }
  0xa8   : > { %v293_v57 = vsel %vm278_vm0, %v1522_v51, 0.0  ;;  %v281_v17 = vsel %vm278_vm0, %v1521_v52, %v1522_v51  ;;  %v1527_v58 = vunpack.i.h.bf16 %v1525_v56  ;;  %v1526_v45 = vunpack.i.l.bf16 %v1525_v56  ;;  %p1726_p12 = pnand %p1725_p11, %p1830_p5  ;;  %p1731_p2 = por %p1730_p1, %p1729_p0 }
  0xa9   : > { %v304_v28 = vsel %vm2034_vm2, %v293_v57, 0.0  ;;  %v303_v19 = vsel %vm2030_vm1, %v281_v17, 0.0  ;;  %v1542_v17 = vunpack.i.h.bf16 %v1540_v46 }
  0xaa   : > { %v2171_v61 = vrot.slane %v304_v28, 2  ;;  %v2173_v35 = vrot.slane %v303_v19, 2  ;;  %1704 = vrot.lane.b32.xlu1 %v1703_v53, %s1778_s5  ;;  %v294_v36 = vsel %vm278_vm0, %v1527_v58, 0.0  ;;  %v282_v3 = vsel %vm278_vm0, %v1526_v45, %v1527_v58  ;;  %p1727_p13 = pneg %p1726_p12 }
  0xab   : > { %v306_v8 = vsel %vm2034_vm2, %v294_v36, 0.0  ;;  %v305_v1 = vsel %vm2030_vm1, %v282_v3, 0.0  ;;  %v374_v28 = vsel %vm370_vm7, %v1541_v62, %v1542_v17 }
  0xac   : > { %v689_v21 = vrot.slane %v306_v8, 2  ;;  %v688_v9 = vrot.slane %v305_v1, 2  ;;  %v925_v29 = vsel %vm920_vm8, %v916_v16, %v2173_v35  ;;  %v926_v39 = vsel %vm920_vm8, %v917_v6, %v2171_v61  ;;  %p1732_p3 = pnand %p1731_p2, %p1727_p13 }
  0xad   : > { %v1535_v26 = vpop.permute.xlu0 %1534  ;;  %1679 = vrot.lane.b32.xlu2 %v1678_v60, %s1778_s5  ;;  %v2187_v25 = vpack.c.bf16 %v926_v39, %v925_v29  ;;  %v1565_v51 = vpop.permute.xlu2 %1564  ;;  %v394_v60 = vsel %vm2049_vm4, %v374_v28, 0.0 }
  0xae   : > { %v1537_v27 = vunpack.i.h.bf16 %v1535_v26  ;;  %v1536_v38 = vunpack.i.l.bf16 %v1535_v26  ;;  %v927_v34 = vsel %vm920_vm8, %v918_v2, %v688_v9  ;;  %v928_v55 = vsel %vm920_vm8, %v919_v50, %v689_v21 }
  0xaf   : > { %v2195_v23 = vpack.c.bf16 %v928_v55, %v927_v34  ;;  %v1566_v36 = vunpack.i.l.bf16 %v1565_v51  ;;  %v709_v8 = vrot.slane %v394_v60, 7  ;;  %vm947_vm8 = vcmask 1046528  }
  0xb0   : > { %v372_v14 = vsel %vm370_vm7, %v1532_v42, %v1536_v38  ;;  %v373_v16 = vsel %vm370_vm7, %v1537_v27, %v1541_v62 }
  0xb1   : > { %v388_v6 = vsel %vm218_vm5, 0.0, %v373_v16  ;;  %v392_v5 = vsel %vm2049_vm4, %v372_v14, 0.0 }
  0xb2   : > { %v393_v43 = vsel %vm2042_vm3, %v388_v6, 0.0  ;;  %v707_v30 = vrot.slane %v392_v5, 7  ;;  %v2257_v6 = vsel %vm929_vm9, %v2109_v12, %v709_v8  ;;  %v1567_v5 = vunpack.i.h.bf16 %v1565_v51 }
  0xb3   : > { %v708_v31 = vrot.slane %v393_v43, 7 }
  0xb4   : > { %v2207_v42 = vsel %vm929_vm9, %v2062_v13, %v707_v30  ;;  %v1009_v30 = vunpack.c.l.b16 %v2138_v32 }
  0xb5   : > { %v1545_v15 = vpop.permute.xlu0 %1544  ;;  %v2211_v44 = vsel %vm929_vm9, %v2116_v37, %v708_v31  ;;  %v1570_v56 = vpop.permute.xlu2 %1569  ;;  %v1010_v31 = vunpack.c.h.b16 %v2138_v32 }
  0xb6   : > { %v1547_v47 = vunpack.i.h.bf16 %v1545_v15  ;;  %v1546_v10 = vunpack.i.l.bf16 %v1545_v15  ;;  %v1572_v46 = vunpack.i.h.bf16 %v1570_v56  ;;  %v1571_v27 = vunpack.i.l.bf16 %v1570_v56 }
  0xb8   : > { %v377_v33 = vsel %vm370_vm7, %v1546_v10, %v1547_v47  ;;  %v378_v48 = vsel %vm370_vm7, %v1547_v47, %v1551_v40  ;;  %v454_v43 = vsel %vm446_vm11, %v1571_v27, %v1572_v46 }
  0xb9   : > { %v390_v11 = vsel %vm218_vm5, 0.0, %v377_v33  ;;  %v398_v0 = vsel %vm2049_vm4, %v378_v48, 0.0  ;;  %v1552_v33 = vunpack.i.h.bf16 %v2202_v63  ;;  %v1061_v48 = vunpack.c.l.b16 %v2158_v49 }
  0xba   : > { %v397_v13 = vsel %vm2042_vm3, %v390_v11, 0.0  ;;  %v713_v20 = vrot.slane %v398_v0, 7  ;;  %v1062_v11 = vunpack.c.h.b16 %v2158_v49  ;;  %v466_v0 = vsel %vm278_vm0, %v454_v43, 0.0 }
  0xbb   : > { %v1555_v7 = vpop.permute.xlu1 %1554  ;;  %v712_v2 = vrot.slane %v397_v13, 7  ;;  %v474_v46 = vsel %vm2034_vm2, %v466_v0, 0.0 }
  0xbc   : > { %v2221_v37 = vsel %vm929_vm9, %v689_v21, %v713_v20  ;;  %v1557_v62 = vunpack.i.h.bf16 %v1555_v7  ;;  %v1556_v39 = vunpack.i.l.bf16 %v1555_v7  ;;  %v1157_v20 = vunpack.c.l.b16 %v2195_v23 }
  0xbd   : > { %v2224_v24 = vsel %vm929_vm9, %v688_v9, %v712_v2  ;;  %v1560_v50 = vpop.permute.xlu0 %1559  ;;  %v2234_v45 = vpop.permute.xlu2 %1584 }
  0xbe   : > { %v1562_v3 = vunpack.i.h.bf16 %v1560_v50  ;;  %v1587_v1 = vunpack.i.h.bf16 %v2234_v45  ;;  %v1586_v21 = vunpack.i.l.bf16 %v2234_v45  ;;  %v1561_v26 = vunpack.i.l.bf16 %v1560_v50 }
  0xbf   : > { %v450_v40 = vsel %vm446_vm11, %v1556_v39, %v1557_v62 }
  0xc0   : > { %v448_v38 = vsel %vm446_vm11, %v1562_v3, %v1566_v36  ;;  %v541_v55 = vsel %vm538_vm10, %v1586_v21, %v1587_v1  ;;  %v449_v15 = vsel %vm446_vm11, %v1561_v26, %v1556_v39  ;;  %v464_v7 = vsel %vm278_vm0, %v450_v40, 0.0 }
  0xc1   : > { %v463_v47 = vsel %vm278_vm0, %v448_v38, 0.0  ;;  %v556_v12 = vsel %vm218_vm5, 0.0, %v541_v55  ;;  %v447_v2 = vsel %vm446_vm11, %v1567_v5, %v1562_v3  ;;  %v469_v51 = vsel %vm2030_vm1, %v449_v15, 0.0 }
  0xc2   : > { %v468_v50 = vsel %vm2034_vm2, %v463_v47, 0.0  ;;  %v561_v17 = vsel %vm2042_vm3, %v556_v12, 0.0  ;;  %v467_v62 = vsel %vm2030_vm1, %v447_v2, 0.0  ;;  %v2301_v26 = vrot.slane %v469_v51, 1 }
  0xc3   : > { %v2226_v52 = vpop.permute.xlu1 %1574  ;;  %v821_v38 = vrot.slane %v561_v17, 6 }
  0xc4   : > { %v1576_v10 = vunpack.i.l.bf16 %v2226_v52 }
  0xc5   : > { %v2243_v9 = vpop.permute.xlu2 %1604 }
  0xc6   : > { %v453_v56 = vsel %vm446_vm11, %v1576_v10, %v1571_v27  ;;  %v1607_v51 = vunpack.i.h.bf16 %v2243_v9 }
  0xc7   : > { %v473_v27 = vsel %vm2030_vm1, %v453_v56, 0.0 }
  0xc8   : > { %v2228_v53 = vpop.permute.xlu0 %1594 }
  0xc9   : > { %v1597_v14 = vunpack.i.h.bf16 %v2228_v53  ;;  %v1596_v16 = vunpack.i.l.bf16 %v2228_v53  ;;  %v1577_v53 = vunpack.i.h.bf16 %v2226_v52  ;;  %v470_v52 = vsel %vm2034_vm2, %v464_v7, 0.0 }
  0xca   : > { %v2314_v0 = vrot.slane %v470_v52, 1 }
  0xcb   : > { %v2230_v57 = vpop.permute.xlu1 %1579  ;;  %v540_v13 = vsel %vm538_vm10, %v1596_v16, %v1597_v14 }
  0xcc   : > { %v1581_v28 = vunpack.i.l.bf16 %v2230_v57  ;;  %v1582_v36 = vunpack.i.h.bf16 %v2230_v57  ;;  %v560_v3 = vsel %vm2049_vm4, %v540_v13, 0.0  ;;  %v2299_v57 = vrot.slane %v468_v50, 1 }
  0xcd   : > { %v820_v5 = vrot.slane %v560_v3, 6  ;;  %v2316_v13 = vrot.slane %v474_v46, 1  ;;  %v2320_v50 = vrot.slane %v467_v62, 1 }
  0xce   : > { %v452_v14 = vsel %vm446_vm11, %v1577_v53, %v1581_v28  ;;  %v451_v15 = vsel %vm446_vm11, %v1582_v36, %v1577_v53  ;;  %v2325_v53 = vrot.slane %v473_v27, 1  ;;  %vm894_vm11 = vcmask 785408  }
  0xcf   : > { %v2341_v3 = vsel %vm2682_vm12, %v2299_v57, %v820_v5 }
  0xd2   : > { %v2232_v58 = vpop.permute.xlu0 %1599 }
  0xd3   : > { %v2237_v19 = vpop.permute.xlu1 %1589  ;;  %v1602_v43 = vunpack.i.h.bf16 %v2232_v58  ;;  %v1601_v40 = vunpack.i.l.bf16 %v2232_v58  ;;  %v465_v58 = vsel %vm278_vm0, %v452_v14, 0.0 }
  0xd4   : > { %v1592_v39 = vunpack.i.h.bf16 %v2237_v19  ;;  %v1591_v47 = vunpack.i.l.bf16 %v2237_v19  ;;  %v1606_v19 = vunpack.i.l.bf16 %v2243_v9  ;;  %v472_v52 = vsel %vm2034_vm2, %v465_v58, 0.0 }
  0xd5   : > { %v545_v56 = vsel %vm538_vm10, %v1601_v40, %v1602_v43 }
  0xd6   : > { %v539_v7 = vsel %vm538_vm10, %v1592_v39, %v1596_v16  ;;  %v2332_v16 = vsel %vm2682_vm12, %v2301_v26, %v821_v38  ;;  %v542_v28 = vsel %vm538_vm10, %v1587_v1, %v1591_v47  ;;  %v558_v39 = vsel %vm218_vm5, 0.0, %v545_v56 }
  0xd7   : > { %v555_v17 = vsel %vm218_vm5, 0.0, %v539_v7  ;;  %v546_v45 = vsel %vm538_vm10, %v1602_v43, %v1606_v19  ;;  %v562_v5 = vsel %vm2049_vm4, %v542_v28, 0.0  ;;  %v565_v7 = vsel %vm2042_vm3, %v558_v39, 0.0 }
  0xd8   : > { %v559_v14 = vsel %vm2042_vm3, %v555_v17, 0.0  ;;  %v822_v56 = vrot.slane %v562_v5, 6 }
  0xd9   : > { %v819_v28 = vrot.slane %v559_v14, 6 }
  0xdb   : > { %v2245_v29 = vpop.permute.xlu0 %1609  ;;  %v2248_v34 = vpop.permute.xlu1 %1614 }
  0xdc   : > { %v1612_v10 = vunpack.i.h.bf16 %v2245_v29  ;;  %v1611_v12 = vunpack.i.l.bf16 %v2245_v29  ;;  %v1616_v2 = vunpack.i.l.bf16 %v2248_v34  ;;  %v471_v29 = vsel %vm2030_vm1, %v451_v15, 0.0 }
  0xdd   : > { %v2284_v60 = vpop.permute.xlu2 %1639  ;;  %v1617_v1 = vunpack.i.h.bf16 %v2248_v34 }
  0xde   : > { %v618_v36 = vsel %vm614_vm13, %v1611_v12, %v1612_v10  ;;  %v617_v46 = vsel %vm614_vm13, %v1616_v2, %v1611_v12  ;;  %v1641_v40 = vunpack.i.l.bf16 %v2284_v60  ;;  %v566_v2 = vsel %vm2049_vm4, %v546_v45, 0.0 }
  0xdf   : > { %v632_v15 = vsel %vm278_vm0, %v618_v36, 0.0  ;;  %v637_v12 = vsel %vm2030_vm1, %v617_v46, 0.0 }
  0xe0   : > { %v976_v21 = vsel %vm911_vm6, %v637_v12, 0.0 }
  0xe3   : > { %v2289_v8 = vpop.permute.xlu0 %1619  ;;  %v2305_v55 = vpop.permute.xlu1 %1624 }
  0xe4   : > { %v1621_v27 = vunpack.i.l.bf16 %v2289_v8  ;;  %v1622_v47 = vunpack.i.h.bf16 %v2289_v8  ;;  %v1627_v43 = vunpack.i.h.bf16 %v2305_v55  ;;  %v1626_v34 = vunpack.i.l.bf16 %v2305_v55 }
  0xe5   : > { %v638_v8 = vsel %vm2034_vm2, %v632_v15, 0.0 }
  0xe6   : > { %v616_v17 = vsel %vm614_vm13, %v1617_v1, %v1621_v27  ;;  %v615_v39 = vsel %vm614_vm13, %v1622_v47, %v1617_v1  ;;  %v622_v45 = vsel %vm614_vm13, %v1626_v34, %v1627_v43  ;;  %v2391_v47 = vrot.slane %v471_v29, 1 }
  0xe7   : > { %v631_v14 = vsel %vm278_vm0, %v616_v17, 0.0  ;;  %v2393_v43 = vrot.slane %v472_v52, 1  ;;  %v635_v17 = vsel %vm2030_vm1, %v615_v39, 0.0 }
  0xe8   : > { %v636_v29 = vsel %vm2034_vm2, %v631_v14, 0.0  ;;  %v974_v39 = vsel %vm911_vm6, %v635_v17, 0.0 }
  0xeb   : > { %v2352_v38 = vpop.permute.xlu0 %1629 }
  0xec   : > { %v1631_v14 = vunpack.i.l.bf16 %v2352_v38  ;;  %v1632_v17 = vunpack.i.h.bf16 %v2352_v38 }
  0xef   : > { %v2346_v62 = vpop.permute.xlu2 %1654 }
  0xf2   : > { %v1635_v10 = vpop.permute.xlu1 %1634 }
  0xf3   : > { %v1637_v58 = vunpack.i.h.bf16 %v1635_v10  ;;  %v1636_v19 = vunpack.i.l.bf16 %v1635_v10 }
  0xf5   : > { %v773_v36 = vsel %vm770_vm14, %v1636_v19, %v1637_v58  ;;  %v774_v46 = vsel %vm770_vm14, %v1637_v58, %v1641_v40  ;;  %v977_v40 = vsel %vm911_vm6, %v638_v8, 0.0  ;;  %v1642_v58 = vunpack.i.h.bf16 %v2284_v60 }
  0xf6   : > { %v941_v27 = vsel %vm938_vm15, %v2211_v44, %v773_v36  ;;  %v942_v5 = vsel %vm938_vm15, %v2257_v6, %v774_v46  ;;  %v2395_v44 = vrot.slane %v566_v2, 6  ;;  %v2397_v6 = vrot.slane %v565_v7, 6 }
  0xf7   : > { %v2383_v15 = vpop.permute.xlu2 %1659  ;;  %v950_v10 = vsel %vm947_vm8, %v941_v27, %v2301_v26  ;;  %v951_v1 = vsel %vm947_vm8, %v942_v5, %v2314_v0  ;;  %v634_v19 = vsel %vm278_vm0, %v622_v45, 0.0  ;;  %v2403_v26 = vpop.permute.xlu0 %1669  ;;  %v2407_v52 = vpack.c.bf16 %v977_v40, %v976_v21 }
  0xf8   : > { %v987_v12 = vpack.c.bf16 %v951_v1, %v950_v10  ;;  %v957_v60 = vsel %vm2682_vm12, %v2320_v50, %v819_v28  ;;  %v960_v45 = vsel %vm2682_vm12, %v2314_v0, %v822_v56  ;;  %v642_v5 = vsel %vm2034_vm2, %v634_v19, 0.0 }
  0xf9   : > { %v975_v0 = vsel %vm911_vm6, %v636_v29, 0.0  ;;  %v1067_v49 = vunpack.c.l.b16 %v2407_v52  ;;  %v1068_v10 = vunpack.c.h.b16 %v2407_v52  ;;  %vm965_vm12 = vcmask 1044480  }
  0xfa   : > { %v1645_v8 = vpop.permute.xlu1 %1644  ;;  %v1063_v2 = vunpack.c.l.b16 %v987_v12  ;;  %v1064_v36 = vunpack.c.h.b16 %v987_v12  ;;  %v1657_v29 = vunpack.i.h.bf16 %v2346_v62  ;;  %v1662_v38 = vunpack.i.h.bf16 %v2383_v15 }
  0xfb   : > { %v1647_v46 = vunpack.i.h.bf16 %v1645_v8  ;;  %v1646_v7 = vunpack.i.l.bf16 %v1645_v8  ;;  %v621_v8 = vsel %vm614_vm13, %v1631_v14, %v1626_v34 }
  0xfc   : > { %v2416_v27 = vpack.c.b16 %v1063_v2, %v1061_v48  ;;  %v2420_v21 = vpack.c.b16 %v1064_v36, %v1062_v11 }
  0xfd   : > { %v771_v28 = vsel %vm770_vm14, %v1642_v58, %v1646_v7  ;;  %v772_v40 = vsel %vm770_vm14, %v1646_v7, %v1647_v46  ;;  %v2441_v58 = vsel %vm911_vm6, %v642_v5, 0.0  ;;  %v1661_v5 = vunpack.i.l.bf16 %v2383_v15 }
  0xfe   : > { %v939_v56 = vsel %vm938_vm15, %v2120_v18, %v771_v28  ;;  %v940_v48 = vsel %vm938_vm15, %v2207_v42, %v772_v40  ;;  %v985_v42 = vpack.c.bf16 %v975_v0, %v974_v39 }
  0xff   : > { %v2433_v11 = vpop.permute.xlu2 %1664  ;;  %v948_v1 = vsel %vm947_vm8, %v939_v56, %v2320_v50  ;;  %v949_v12 = vsel %vm947_vm8, %v940_v48, %v2299_v57  ;;  %v1656_v50 = vunpack.i.l.bf16 %v2346_v62  ;;  %v1671_v57 = vunpack.i.l.bf16 %v2403_v26 }
 0x100   : > { %v1666_v18 = vunpack.i.l.bf16 %v2433_v11  ;;  %v983_v19 = vpack.c.bf16 %v949_v12, %v948_v1  ;;  %v1672_v48 = vunpack.i.h.bf16 %v2403_v26  ;;  %v543_v26 = vsel %vm538_vm10, %v1607_v51, %v1661_v5 }
 0x101   : > { %v620_v15 = vsel %vm614_vm13, %v1632_v17, %v1671_v57 }
 0x102   : > { %v375_v2 = vsel %vm370_vm7, %v1552_v33, %v1666_v18  ;;  %v1685_v36 = vpop.permute.xlu0 %1684  ;;  %v1011_v46 = vunpack.c.l.b16 %v983_v19  ;;  %v1012_v7 = vunpack.c.h.b16 %v983_v19 }
 0x103   : > { %v389_v55 = vsel %vm218_vm5, 0.0, %v375_v2  ;;  %v1687_v34 = vunpack.i.h.bf16 %v1685_v36  ;;  %v1686_v39 = vunpack.i.l.bf16 %v1685_v36  ;;  %v1016_v36 = vunpack.c.h.b16 %v985_v42 }
 0x104   : > { %v395_v62 = vsel %vm2042_vm3, %v389_v55, 0.0  ;;  %v1650_v14 = vpop.permute.xlu1 %1649  ;;  %v2463_v63 = vpack.c.b16 %v1011_v46, %v1009_v30  ;;  %v2467_v33 = vpack.c.b16 %v1012_v7, %v1010_v31  ;;  %v619_v46 = vsel %vm614_vm13, %v1672_v48, %v1632_v17 }
 0x105   : > { %v710_v28 = vrot.slane %v395_v62, 7  ;;  %v1652_v40 = vunpack.i.h.bf16 %v1650_v14  ;;  %v1651_v0 = vunpack.i.l.bf16 %v1650_v14  ;;  %v895_v56 = vsel %vm894_vm11, %v1657_v29, %v1686_v39 }
 0x106   : > { %v896_v1 = vsel %vm894_vm11, %v1686_v39, %v1687_v34  ;;  %v966_v12 = vsel %vm965_vm12, %v957_v60, %v895_v56  ;;  %v544_v29 = vsel %vm538_vm10, %v1661_v5, %v1662_v38  ;;  %v557_v38 = vsel %vm218_vm5, 0.0, %v543_v26 }
 0x107   : > { %v897_v30 = vsel %vm894_vm11, %v1651_v0, %v1652_v40  ;;  %v898_v19 = vsel %vm894_vm11, %v1652_v40, %v1656_v50  ;;  %v967_v32 = vsel %vm965_vm12, %v2341_v3, %v896_v1  ;;  %v2480_v31 = vsel %vm929_vm9, %v2173_v35, %v710_v28  ;;  %v2486_v57 = vpop.permute.xlu2 %1679 }
 0x108   : > { %v984_v60 = vpack.c.bf16 %v967_v32, %v966_v12  ;;  %v968_v2 = vsel %vm965_vm12, %v2332_v16, %v897_v30  ;;  %v641_v50 = vsel %vm2030_vm1, %v621_v8, 0.0  ;;  %v1015_v3 = vunpack.c.l.b16 %v985_v42 }
 0x109   : > { %v969_v35 = vsel %vm965_vm12, %v960_v45, %v898_v19  ;;  %v564_v55 = vsel %vm2049_vm4, %v544_v29, 0.0  ;;  %v633_v34 = vsel %vm278_vm0, %v620_v15, 0.0  ;;  %v1681_v16 = vunpack.i.l.bf16 %v2486_v57  ;;  %v1439_v15 = vld [vmem:[%s2680_s1] sm:$0x30] }
 0x10a   : > { %v1013_v9 = vunpack.c.l.b16 %v984_v60  ;;  %v1014_v7 = vunpack.c.h.b16 %v984_v60  ;;  %v988_v51 = vpack.c.bf16 %v969_v35, %v968_v2  ;;  %v639_v17 = vsel %vm2030_vm1, %v619_v46, 0.0 }
 0x10b   : > { %v980_v40 = vsel %vm911_vm6, %v641_v50, 0.0  ;;  %v563_v0 = vsel %vm2042_vm3, %v557_v38, 0.0  ;;  %v640_v54 = vsel %vm2034_vm2, %v633_v34, 0.0  ;;  %v824_v1 = vrot.slane %v564_v55, 6 }
 0x10c   : > { %v1675_v39 = vpop.permute.xlu1 %1674  ;;  %v2499_v8 = vpop.permute.xlu0 %1689  ;;  %v1019_v42 = vpack.c.b16 %v1015_v3, %v1013_v9  ;;  %v1020_v5 = vpack.c.b16 %v1016_v36, %v1014_v7  ;;  %v1065_v45 = vunpack.c.l.b16 %v988_v51  ;;  %v1066_v62 = vunpack.c.h.b16 %v988_v51 }
 0x10d   : > { %v1677_v14 = vunpack.i.h.bf16 %v1675_v39  ;;  %v1676_v28 = vunpack.i.l.bf16 %v1675_v39  ;;  %v1667_v12 = vunpack.i.h.bf16 %v2433_v11  ;;  %v1691_v19 = vunpack.i.l.bf16 %v2499_v8 }
 0x10e   : > { %1035 = vmatpush.bf16.msra.mxu0 %v1019_v42  ;;  %1049 = vmatpush.bf16.msra.mxu1 %v1020_v5  ;;  %v1071_v56 = vpack.c.b16 %v1067_v49, %v1065_v45  ;;  %v1072_v48 = vpack.c.b16 %v1068_v10, %v1066_v62  ;;  %v1692_v10 = vunpack.i.h.bf16 %v2499_v8  ;;  %v2527_v41 = vor.u32 %v1439_v15, %v1425_v4 }
 0x10f   : > { %v777_v30 = vsel %vm770_vm14, %v1676_v28, %v1677_v14  ;;  %v778_v49 = vsel %vm770_vm14, %v1677_v14, %v1681_v16  ;;  %vm2693_vm0 = vcmask 1041408   ;;  %v823_v60 = vrot.slane %v563_v0, 6 }
 0x110   : > { %v945_v52 = vsel %vm938_vm15, %v2224_v24, %v777_v30  ;;  %v946_v32 = vsel %vm938_vm15, %v2221_v37, %v778_v49  ;;  %1083 = vmatpush.bf16.msra.mxu2 %v1071_v56  ;;  %1097 = vmatpush.bf16.msra.mxu3 %v1072_v48  ;;  %v964_v26 = vsel %vm2693_vm0, %v2316_v13, %v2395_v44  ;;  %vm1025_vm1 = vcmask 261120   ;;  %vm2694_vm2 = vmmov %vm2693_vm0 }
 0x111   : > { %v954_v29 = vsel %vm947_vm8, %v945_v52, %v2325_v53  ;;  %v955_v24 = vsel %vm947_vm8, %v946_v32, %v2316_v13  ;;  %v963_v37 = vsel %vm2694_vm2, %v2325_v53, %v2397_v6  ;;  %vm2695_vm3 = vmmov %vm2693_vm0  ;;  %v978_v50 = vsel %vm911_vm6, %v639_v17, 0.0 }
 0x112   : > { %1036 = vmatpush.bf16.msra.mxu0 %v2463_v63  ;;  %1050 = vmatpush.bf16.msra.mxu1 %v2467_v33  ;;  %v995_v2 = vpack.c.bf16 %v955_v24, %v954_v29  ;;  %v962_v44 = vsel %vm2695_vm3, %v2393_v43, %v824_v1  ;;  %v979_v3 = vsel %vm911_vm6, %v640_v54, 0.0  ;;  %v997_v13 = vpack.c.bf16 %v2441_v58, %v980_v40  ;;  %vm2696_vm5 = vmmov %vm2693_vm0 }
 0x113   : > { %v376_v63 = vsel %vm370_vm7, %v1666_v18, %v1667_v12  ;;  %v901_v33 = vsel %vm894_vm11, %v1691_v19, %v1692_v10  ;;  %v961_v11 = vsel %vm2696_vm5, %v2391_v47, %v823_v60  ;;  %v2697_v58 = vunpack.c.h.b16 %v2195_v23 }
 0x114   : > { %1084 = vmatpush.bf16.msra.mxu2 %v2416_v27  ;;  %1098 = vmatpush.bf16.msra.mxu3 %v2420_v21  ;;  %v1700_v53 = vpop.permute.xlu0 %1699  ;;  %v1695_v6 = vpop.permute.xlu1 %1694  ;;  %v1159_v36 = vunpack.c.l.b16 %v995_v2  ;;  %v1160_v35 = vunpack.c.h.b16 %v995_v2  ;;  %v993_v27 = vpack.c.bf16 %v979_v3, %v978_v50  ;;  %v396_v38 = vsel %vm2049_vm4, %v376_v63, 0.0 }
 0x115   : > { %v1702_v46 = vunpack.i.h.bf16 %v1700_v53  ;;  %v1701_v9 = vunpack.i.l.bf16 %v1700_v53  ;;  %v1697_v7 = vunpack.i.h.bf16 %v1695_v6  ;;  %v1696_v51 = vunpack.i.l.bf16 %v1695_v6  ;;  %1427 = vmatmul.msk.bf16.vlgmr.msra.gmra.mxu0 %vm1025_vm1, %v2527_v41  ;;  %1428 = vmatmul.msk.bf16.vlgmr.msra.gmra.mxu1 %vm1025_vm1, %v2527_v41 }
 0x116   : > { %v1165_v21 = vpack.c.b16 %v1159_v36, %v1157_v20  ;;  %v1166_v18 = vpack.c.b16 %v1160_v35, %v2697_v58  ;;  %v972_v39 = vsel %vm965_vm12, %v963_v37, %v901_v33  ;;  %v711_v5 = vrot.slane %v396_v38, 7 }
 0x117   : > { %v900_v55 = vsel %vm894_vm11, %v1701_v9, %v1702_v46  ;;  %v899_v34 = vsel %vm894_vm11, %v1697_v7, %v1701_v9  ;;  %v902_v16 = vsel %vm894_vm11, %v1692_v10, %v1696_v51  ;;  %1429 = vmatmul.msk.bf16.vlgmr.msra.gmra.mxu2 %vm1025_vm1, %v2527_v41  ;;  %1430 = vmatmul.msk.bf16.vlgmr.msra.gmra.mxu3 %vm1025_vm1, %v2527_v41  ;;  %v1115_v45 = vunpack.c.l.b16 %v993_v27 }
 0x118   : > { %v970_v20 = vsel %vm965_vm12, %v961_v11, %v899_v34  ;;  %v971_v23 = vsel %vm965_vm12, %v962_v44, %v900_v55  ;;  %v973_v59 = vsel %vm965_vm12, %v964_v26, %v902_v16  ;;  %v1116_v62 = vunpack.c.h.b16 %v993_v27 }
 0x119   : > { %v992_v8 = vpack.c.bf16 %v971_v23, %v970_v20  ;;  %v996_v42 = vpack.c.bf16 %v973_v59, %v972_v39  ;;  %v1682_v0 = vunpack.i.h.bf16 %v2486_v57  ;;  %v1163_v48 = vunpack.c.l.b16 %v997_v13 }
 0x11a   : > { %v1164_v4 = vunpack.c.h.b16 %v997_v13  ;;  %v935_v52 = vsel %vm929_vm9, %v2171_v61, %v711_v5  ;;  %v1109_v24 = vunpack.c.l.b16 %v2187_v25  ;;  %v1110_v37 = vunpack.c.h.b16 %v2187_v25 }
 0x11b   : > { %v1113_v17 = vunpack.c.l.b16 %v992_v8  ;;  %v1114_v14 = vunpack.c.h.b16 %v992_v8  ;;  %v1161_v28 = vunpack.c.l.b16 %v996_v42  ;;  %v1162_v40 = vunpack.c.h.b16 %v996_v42 }
 0x11c   : > { %v1705_v56 = vpop.permute.xlu1 %1704  ;;  %vm1292_vm4 = vcmask 130112   ;;  %vm1303_vm6 = vcmask 1041409   ;;  %vm1322_vm7 = vcmask 228512   ;;  %vm1305_vm9 = vcmask 1042434  }
 0x11d   : > { %v1707_v15 = vunpack.i.h.bf16 %v1705_v56  ;;  %v1706_v54 = vunpack.i.l.bf16 %v1705_v56  ;;  %v1119_v1 = vpack.c.b16 %v1115_v45, %v1113_v17  ;;  %v1120_v12 = vpack.c.b16 %v1116_v62, %v1114_v14 }
 0x11e   : > { %v1167_v30 = vpack.c.b16 %v1163_v48, %v1161_v28  ;;  %v1168_v49 = vpack.c.b16 %v1164_v4, %v1162_v40  ;;  %vm1307_vm10 = vcmask 1043459   ;;  %vm1337_vm12 = vcmask 97280  }
 0x11f   : > { %v775_v10 = vsel %vm770_vm14, %v1682_v0, %v1706_v54  ;;  %v776_v19 = vsel %vm770_vm14, %v1706_v54, %v1707_v15  ;;  %1131 = vmatpush.bf16.msrb.mxu0 %v1119_v1  ;;  %1145 = vmatpush.bf16.msrb.mxu1 %v1120_v12  ;;  %vm1339_vm13 = vcmask 191488  }
 0x120   : > { %v943_v57 = vsel %vm938_vm15, %v2480_v31, %v775_v10  ;;  %v944_v32 = vsel %vm938_vm15, %v935_v52, %v776_v19  ;;  %1179 = vmatpush.bf16.msrb.mxu2 %v1167_v30  ;;  %1193 = vmatpush.bf16.msrb.mxu3 %v1168_v49 }
 0x121   : > { %v952_v26 = vsel %vm947_vm8, %v943_v57, %v2391_v47  ;;  %v953_v29 = vsel %vm947_vm8, %v944_v32, %v2393_v43 }
 0x122   : > { %v991_v61 = vpack.c.bf16 %v953_v29, %v952_v26 }
 0x124   : > { %1180 = vmatpush.bf16.msrb.mxu2 %v1165_v21  ;;  %1194 = vmatpush.bf16.msrb.mxu3 %v1166_v18  ;;  %v1111_v60 = vunpack.c.l.b16 %v991_v61  ;;  %v1112_v2 = vunpack.c.h.b16 %v991_v61 }
 0x126   : > { %v1117_v31 = vpack.c.b16 %v1111_v60, %v1109_v24  ;;  %v1118_v44 = vpack.c.b16 %v1112_v2, %v1110_v37 }
 0x127   : > { %1433 = vmatmul.msk.bf16.vlgmr.msrb.gmra.mxu2 %vm1025_vm1, %v2527_v41  ;;  %1434 = vmatmul.msk.bf16.vlgmr.msrb.gmra.mxu3 %vm1025_vm1, %v2527_v41 }
 0x128   : > { %1132 = vmatpush.bf16.msrb.mxu0 %v1117_v31  ;;  %1146 = vmatpush.bf16.msrb.mxu1 %v1118_v44 }
 0x12b   : > { %1431 = vmatmul.msk.bf16.vlgmr.msrb.gmra.mxu0 %vm1025_vm1, %v2527_v41  ;;  %1432 = vmatmul.msk.bf16.vlgmr.msrb.gmra.mxu1 %vm1025_vm1, %v2527_v41 }
 0x192   : > { %v1038_v47 = vpop.f32.mrf.mxu0  ;;  %v1052_v43 = vpop.f32.mrf.mxu1 }
 0x193   : > { %v1201_v25 = vadd.f32 %v1052_v43, %v1038_v47  ;;  %v1233_v50 = vmul.f32 %v1038_v47, %v1038_v47  ;;  %v1234_v3 = vmul.f32 %v1052_v43, %v1052_v43 }
 0x195   : > { %1202 = vadd.xlane.f32.xlu2 %v1201_v25  ;;  %v1249_v36 = vadd.f32 %v1234_v3, %v1233_v50 }
 0x19a   : > { %v1086_v13 = vpop.f32.mrf.mxu2  ;;  %v1100_v63 = vpop.f32.mrf.mxu3 }
 0x19b   : > { %v1040_v33 = vpop.f32.mrf.mxu0  ;;  %v1054_v53 = vpop.f32.mrf.mxu1  ;;  %v1209_v6 = vadd.f32 %v1100_v63, %v1086_v13  ;;  %v1237_v51 = vmul.f32 %v1086_v13, %v1086_v13  ;;  %v1238_v11 = vmul.f32 %v1100_v63, %v1100_v63 }
 0x19c   : > { %v1204_v35 = vsel %vm938_vm15, %v1040_v33, 0.0  ;;  %v1205_v46 = vsel %vm938_vm15, %v1054_v53, 0.0  ;;  %v1235_v41 = vmul.f32 %v1040_v33, %v1040_v33  ;;  %v1236_v7 = vmul.f32 %v1054_v53, %v1054_v53 }
 0x19d   : > { %1210 = vadd.xlane.f32.xlu1 %v1209_v6  ;;  %1250 = vadd.xlane.f32.xlu2 %v1249_v36  ;;  %v1206_v9 = vadd.f32 %v1205_v46, %v1204_v35  ;;  %v1257_v34 = vadd.f32 %v1238_v11, %v1237_v51  ;;  %v1318_v51 = vadd.s32 4294967284, %v2005_v22 }
 0x19e   : > { %v1252_v58 = vsel %vm938_vm15, %v1235_v41, 0.0  ;;  %v1253_v18 = vsel %vm938_vm15, %v1236_v7, 0.0  ;;  %v1320_v7 = vadd.s32 4294967276, %v2005_v22 }
 0x19f   : > { %1207 = vadd.xlane.f32.xlu0 %v1206_v9  ;;  %v1254_v39 = vadd.f32 %v1253_v18, %v1252_v58  ;;  %v1290_v9 = vadd.s32 4294967288, %v2005_v22 }
 0x1a2   : > { %v1088_v27 = vpop.f32.mrf.mxu2  ;;  %v1102_v21 = vpop.f32.mrf.mxu3 }
 0x1a3   : > { %v1212_v38 = vsel %vm938_vm15, %v1088_v27, 0.0  ;;  %v1213_v55 = vsel %vm938_vm15, %v1102_v21, 0.0  ;;  %v1239_v20 = vmul.f32 %v1088_v27, %v1088_v27  ;;  %v1240_v23 = vmul.f32 %v1102_v21, %v1102_v21 }
 0x1a4   : > { %v1214_v16 = vadd.f32 %v1213_v55, %v1212_v38 }
 0x1a5   : > { %1258 = vadd.xlane.f32.xlu1 %v1257_v34  ;;  %v1260_v42 = vsel %vm938_vm15, %v1239_v20, 0.0  ;;  %v1261_v5 = vsel %vm938_vm15, %v1240_v23, 0.0 }
 0x1a6   : > { %1215 = vadd.xlane.f32.xlu2 %v1214_v16  ;;  %v1262_v14 = vadd.f32 %v1261_v5, %v1260_v42 }
 0x1a7   : > { %1255 = vadd.xlane.f32.xlu0 %v1254_v39 }
 0x1a8   : > { %v1134_v59 = vpop.f32.mrf.mxu0  ;;  %v1148_v8 = vpop.f32.mrf.mxu1 }
 0x1a9   : > { %v1217_v28 = vadd.f32 %v1148_v8, %v1134_v59  ;;  %v1241_v40 = vmul.f32 %v1134_v59, %v1134_v59  ;;  %v1242_v0 = vmul.f32 %v1148_v8, %v1148_v8 }
 0x1aa   : > { %v1182_v45 = vpop.f32.mrf.mxu2  ;;  %v1196_v62 = vpop.f32.mrf.mxu3 }
 0x1ab   : > { %v1225_v17 = vadd.f32 %v1196_v62, %v1182_v45  ;;  %v1265_v52 = vadd.f32 %v1242_v0, %v1241_v40  ;;  %v1245_v24 = vmul.f32 %v1182_v45, %v1182_v45  ;;  %v1246_v60 = vmul.f32 %v1196_v62, %v1196_v62 }
 0x1ad   : > { %1226 = vadd.xlane.f32.xlu1 %v1225_v17  ;;  %v1273_v47 = vadd.f32 %v1246_v60, %v1245_v24 }
 0x1ae   : > { %1263 = vadd.xlane.f32.xlu2 %v1262_v14 }
 0x1af   : > { %1218 = vadd.xlane.f32.xlu0 %v1217_v28 }
 0x1b0   : > { %v1136_v56 = vpop.f32.mrf.mxu0  ;;  %v1150_v48 = vpop.f32.mrf.mxu1 }
 0x1b1   : > { %v1220_v4 = vsel %vm938_vm15, %v1136_v56, 0.0  ;;  %v1243_v15 = vmul.f32 %v1136_v56, %v1136_v56  ;;  %v1221_v54 = vsel %vm938_vm15, %v1150_v48, 0.0  ;;  %v1244_v1 = vmul.f32 %v1150_v48, %v1150_v48 }
 0x1b2   : > { %v1184_v12 = vpop.f32.mrf.mxu2  ;;  %v1198_v30 = vpop.f32.mrf.mxu3  ;;  %v1222_v49 = vadd.f32 %v1221_v54, %v1220_v4 }
 0x1b3   : > { %v1247_v10 = vmul.f32 %v1184_v12, %v1184_v12  ;;  %v1248_v19 = vmul.f32 %v1198_v30, %v1198_v30  ;;  %v1268_v57 = vsel %vm938_vm15, %v1243_v15, 0.0  ;;  %v1269_v32 = vsel %vm938_vm15, %v1244_v1, 0.0 }
 0x1b4   : > { %v1270_v26 = vadd.f32 %v1269_v32, %v1268_v57  ;;  %v1228_v37 = vsel %vm938_vm15, %v1184_v12, 0.0  ;;  %v1229_v2 = vsel %vm938_vm15, %v1198_v30, 0.0 }
 0x1b5   : > { %1223 = vadd.xlane.f32.xlu1 %v1222_v49  ;;  %v1276_v29 = vsel %vm938_vm15, %v1247_v10, 0.0  ;;  %v1277_v61 = vsel %vm938_vm15, %v1248_v19, 0.0  ;;  %v1230_v44 = vadd.f32 %v1229_v2, %v1228_v37 }
 0x1b6   : > { %1266 = vadd.xlane.f32.xlu2 %v1265_v52  ;;  %v1278_v31 = vadd.f32 %v1277_v61, %v1276_v29 }
 0x1b7   : > { %1271 = vadd.xlane.f32.xlu0 %v1270_v26 }
 0x1bd   : > { %1279 = vadd.xlane.f32.xlu1 %v1278_v31 }
 0x1be   : > { %1231 = vadd.xlane.f32.xlu2 %v1230_v44 }
 0x1bf   : > { %1274 = vadd.xlane.f32.xlu0 %v1273_v47 }
 0x208   : > { %v1203_v43 = vpop.xlane.xlu2 %1202 }
 0x209   : > { %v1289_v23 = vperm.slane %v1203_v43, %v2005_v22 }
 0x210   : > { %v1211_v25 = vpop.xlane.xlu1 %1210  ;;  %v1251_v50 = vpop.xlane.xlu2 %1250 }
 0x211   : > { %v1294_v58 = vperm.slane %v1211_v25, %v2005_v22  ;;  %v1319_v8 = vperm.slane %v1251_v50, %v1318_v51 }
 0x212   : > { %v1208_v3 = vpop.xlane.xlu0 %1207 }
 0x213   : > { %v1291_v18 = vperm.slane %v1208_v3, %v1290_v9 }
 0x215   : > { %v1293_v62 = vsel %vm1292_vm4, %v1291_v18, %v1289_v23 }
 0x218   : > { %v1259_v13 = vpop.xlane.xlu1 %1258 }
 0x219   : > { %v1216_v63 = vpop.xlane.xlu2 %1215  ;;  %v1324_v34 = vperm.slane %v1259_v13, %v1318_v51 }
 0x21a   : > { %v1256_v33 = vpop.xlane.xlu0 %1255  ;;  %v1295_v11 = vperm.slane %v1216_v63, %v1290_v9 }
 0x21b   : > { %v1321_v16 = vperm.slane %v1256_v33, %v1320_v7 }
 0x21c   : > { %v1296_v39 = vsel %vm1292_vm4, %v1295_v11, %v1294_v58 }
 0x21d   : > { %v1304_v0 = vsel %vm1303_vm6, %v1296_v39, %v1293_v62  ;;  %v1323_v56 = vsel %vm1322_vm7, %v1321_v16, %v1319_v8 }
 0x220   : > { %v1227_v53 = vpop.xlane.xlu1 %1226 }
 0x221   : > { %v1264_v6 = vpop.xlane.xlu2 %1263  ;;  %v1300_v17 = vperm.slane %v1227_v53, %v2005_v22 }
 0x222   : > { %v1219_v36 = vpop.xlane.xlu0 %1218  ;;  %v1325_v27 = vperm.slane %v1264_v6, %v1320_v7 }
 0x223   : > { %v1297_v20 = vperm.slane %v1219_v36, %v2005_v22 }
 0x224   : > { %v1326_v42 = vsel %vm1322_vm7, %v1325_v27, %v1324_v34 }
 0x225   : > { %v1333_v22 = vsel %vm1303_vm6, %v1326_v42, %v1323_v56 }
 0x228   : > { %v1224_v35 = vpop.xlane.xlu1 %1223 }
 0x229   : > { %v1267_v46 = vpop.xlane.xlu2 %1266  ;;  %v1298_v21 = vperm.slane %v1224_v35, %v1290_v9 }
 0x22a   : > { %v1272_v41 = vpop.xlane.xlu0 %1271  ;;  %v1327_v38 = vperm.slane %v1267_v46, %v1318_v51 }
 0x22b   : > { %v1328_v55 = vperm.slane %v1272_v41, %v1320_v7  ;;  %v1299_v5 = vsel %vm1292_vm4, %v1298_v21, %v1297_v20 }
 0x22c   : > { %v1306_v15 = vsel %vm1305_vm9, %v1299_v5, %v1304_v0 }
 0x22d   : > { %v1329_v14 = vsel %vm1322_vm7, %v1328_v55, %v1327_v38 }
 0x22e   : > { %v1334_v1 = vsel %vm1305_vm9, %v1329_v14, %v1333_v22 }
 0x230   : > { %v1280_v59 = vpop.xlane.xlu1 %1279 }
 0x231   : > { %v1232_v45 = vpop.xlane.xlu2 %1231  ;;  %v1331_v48 = vperm.slane %v1280_v59, %v1320_v7 }
 0x232   : > { %v1301_v28 = vperm.slane %v1232_v45, %v1290_v9  ;;  %v1275_v40 = vpop.xlane.xlu0 %1274 }
 0x233   : > { %v1330_v4 = vperm.slane %v1275_v40, %v1318_v51 }
 0x234   : > { %v1302_v54 = vsel %vm1292_vm4, %v1301_v28, %v1300_v17 }
 0x235   : > { %v1308_v12 = vsel %vm1307_vm10, %v1302_v54, %v1306_v15  ;;  %v1332_v30 = vsel %vm1322_vm7, %v1331_v48, %v1330_v4 }
 0x236   : > { %v1335_v49 = vsel %vm1307_vm10, %v1332_v30, %v1334_v1 }
 0x237   : > { %v1338_v52 = vsel %vm1337_vm12, %v1308_v12, %v1335_v49 }
 0x238   : > { %1340 = vst.msk [vmem:[%s139_s21] sm:$0xf] %vm1339_vm13, %v1338_v52 }
 0x239   : > { %1735 = shalt.err (!%p1732_p3)
}
 0x23a   : > { %1441 = dma.vmem_to_hbm [thread:$0]  (%p1830_p5), %s1355_s25, 64, %s1357_s26, %s1342_s27  }
 0x23b PF: > { %p1447_p4 = scmp.ge.s32.totalorder %s1770_s12, 2  ;;  %s1368_s7 = sand.u32 1, %s1758_s9  }
 0x23c   : > { %s1369_s8 = scalar_lea.sflag [#allocation3], %s1368_s7 }
 0x23d   : > { %p1444_p7 = pnand %p1447_p4, %p1834_p6 }
 0x23f   : > { %p1445_p8 = pneg %p1444_p7 }
 0x241   : > { %1753 = dma.done.wait (%p1445_p8), %s1369_s8, 64  }
 0x242   : > { %1755 = vsyncadd (%p1445_p8), %s1369_s8, 4294967232  ;;  %p12_p9 = scmp.ge.s32.totalorder %s1818_s15, 4   ;;  %s2698_s9 = smov %s1762_s10 }
 0x243   : > { %s2699_s10 = smov %s1766_s11  ;;  %s2700_s11 = smov %s1828_s18 }
 0x244   : > { %s2701_s12 = smov %s1818_s15  ;;  %14 = sbr.rel (!%p12_p9) target bundleno = 3 (0x3), region = 91 }
 0x249   :  { %1375 = vsyncpa [#allocation3], 1 }
 0x24a   :  { %1377 = vsyncpa [#allocation3 + $0x1], 1 }

</bundles_post_ra>
